<compile_context>
chip_gen: v6e
topology: v6e:2x2x1
jax: 0.10.0
libtpu: 0.0.40
codegen_flags: <defaults>
</compile_context>

<pallas_src>
import jax
import jax.numpy as jnp
from jax.experimental import pallas as pl
from jax.experimental.pallas import tpu as pltpu


def _round_up(x, mult):
    return ((x + mult - 1) // mult) * mult


def _cdiv(a, b):
    return (a + b - 1) // b


_COORD_PAD = 8  # pad xyz 3 -> 8 so the distance matmul's K dim is sublane aligned


def _choose_tile_n(n, m_pad, batch):
    """tile_n from the VMEM budget (v7x-safe), padded n, and >=2 grid steps."""
    n128 = _round_up(n, 128)
    # ~4 live f32 (m_pad, tile_n) dense temporaries in the 3-NN selection.
    budget = 24 * 1024 * 1024
    t = max(128, (budget // (16 * m_pad)) // 128 * 128)
    t = min(t, 1024, n128)
    # v7x has 2 TensorCores fed via the parallel grid axes: keep >= 2 steps.
    if batch * _cdiv(n128, t) < 2:
        t = max(128, _round_up(_cdiv(n128, 2), 128))
    return t


def _make_kernel(num_rest, m_pad, m_valid, mlp_dtype):
    """Kernel closed over static sizes / layer count / trailing-MLP dtype."""

    def kernel(*refs):
        (known_ref, unknown_t_ref, unk_feats_ref, wk_ref,
         w0b_ref, b0_ref) = refs[:6]
        rest = refs[6:]
        w_refs = rest[:num_rest]
        b_refs = rest[num_rest:2 * num_rest]
        out_ref = rest[2 * num_rest]

        k = known_ref[0]              # (m_pad, 8)   known xyz (coords zero-padded)
        uT = unknown_t_ref[0]         # (8, tile_n)  unknown xyz, coord-major
        tile_n = uT.shape[1]

        # --- pairwise squared distances on the MXU: ||k||^2 + ||u||^2 - 2 k.u
        k2 = jnp.sum(k * k, axis=1, keepdims=True)            # (m_pad, 1)
        u2 = jnp.sum(uT * uT, axis=0, keepdims=True)          # (1, tile_n)
        ku = jax.lax.dot_general(k, uT, (((1,), (0,)), ((), ())),
                                 preferred_element_type=jnp.float32)
        d2 = k2 + u2 - 2.0 * ku                               # (m_pad, tile_n)

        row = jax.lax.broadcasted_iota(jnp.int32, (m_pad, tile_n), 0)
        BIG = jnp.float32(1e30)
        if m_valid < m_pad:
            # mask padded known rows (no data-scale-dependent sentinel)
            d2 = jnp.where(row >= m_valid, BIG, d2)

        # --- 3 nearest neighbours on squared distances; build the 3-hot weight
        #     matrix incrementally, reusing the (row == sel) mask for dwork.
        W = jnp.zeros((m_pad, tile_n), jnp.float32)
        recip_sum = jnp.zeros((1, tile_n), jnp.float32)
        dwork = d2
        for _ in range(3):
            mval = jnp.min(dwork, axis=0, keepdims=True)              # (1, tile_n)
            sel = jnp.min(jnp.where(dwork <= mval, row, m_pad),
                          axis=0, keepdims=True)                      # first-occurrence idx
            recip = 1.0 / (jnp.sqrt(jnp.maximum(mval, 0.0)) + 1e-8)   # sqrt on (1,tile_n) only
            eq = row == sel
            W = W + jnp.where(eq, recip, 0.0)
            recip_sum = recip_sum + recip
            dwork = jnp.where(eq, BIG, dwork)
        W = W * (1.0 / recip_sum)     # exact (1, tile_n) reciprocal, one broadcast mul

        # --- interpolation fused into MLP layer 0:
        #       h0 = (W0a @ known_feats) @ W + W0b @ skip + b0
        #     (Wk = W0a @ known_feats precomputed per batch in the wrapper.)
        h = (jax.lax.dot_general(wk_ref[0], W, (((1,), (0,)), ((), ())),
                                 preferred_element_type=jnp.float32)
             + jnp.dot(w0b_ref[...], unk_feats_ref[0],
                       preferred_element_type=jnp.float32)
             + b0_ref[...])
        feats = jnp.maximum(h, 0.0)

        # --- remaining SharedMLP layers (1x1 conv + folded BN + ReLU)
        for w_ref, b_ref in zip(w_refs, b_refs):
            h = jnp.dot(w_ref[...].astype(mlp_dtype), feats.astype(mlp_dtype),
                        preferred_element_type=jnp.float32) + b_ref[...]
            feats = jnp.maximum(h, 0.0)

        out_ref[0] = feats

    return kernel


def pointnet_fp_forward(unknown, known, unknow_feats, known_feats,
                        weights, biases, mlp_dtype=jnp.float32):
    """unknown (B,n,3), known (B,m,3), unknow_feats (B,C1,n), known_feats (B,C2,m)
    -> (B, mlp[-1], n).  mlp_dtype only affects the trailing SharedMLP matmuls
    (selection + interpolation stay f32); f32 accumulation everywhere."""
    B, n, _ = unknown.shape
    _, C2, m = known_feats.shape
    C1 = unknow_feats.shape[1]
    c_h0 = weights[0].shape[0]
    c_out = weights[-1].shape[0]
    num_rest = len(weights) - 1

    m_pad = _round_up(m, 128)
    tile_n = _choose_tile_n(n, m_pad, B)
    n_pad = _round_up(n, tile_n)

    f32 = jnp.float32
    # unknown xyz: coord-major (B, 8, n_pad); known xyz: (B, m_pad, 8).
    unknown_t = jnp.transpose(
        jnp.pad(unknown.astype(f32),
                ((0, 0), (0, n_pad - n), (0, _COORD_PAD - 3))), (0, 2, 1))
    known_p = jnp.pad(known.astype(f32),
                      ((0, 0), (0, m_pad - m), (0, _COORD_PAD - 3)))
    unk_feats_p = jnp.pad(unknow_feats.astype(f32),
                          ((0, 0), (0, 0), (0, n_pad - n)))
    known_feats_p = jnp.pad(known_feats.astype(f32),
                            ((0, 0), (0, 0), (0, m_pad - m)))

    # Split layer-0 weight over the concat order [interp(C2), skip(C1)] and fold
    # the interpolation projection: Wk = W0a @ known_feats  -> (B, c_h0, m_pad).
    w0a = weights[0][:, :C2]
    w0b = weights[0][:, C2:]
    b0 = biases[0]
    wk = jnp.einsum('oc,bcm->bom', w0a, known_feats_p)
    rest_w = list(weights[1:])
    rest_b = list(biases[1:])

    in_specs = [
        pl.BlockSpec((1, m_pad, _COORD_PAD), lambda b, i: (b, 0, 0)),   # known xyz
        pl.BlockSpec((1, _COORD_PAD, tile_n), lambda b, i: (b, 0, i)),  # unknown xyz tile
        pl.BlockSpec((1, C1, tile_n), lambda b, i: (b, 0, i)),          # skip feats tile
        pl.BlockSpec((1, c_h0, m_pad), lambda b, i: (b, 0, 0)),         # Wk (resident per b)
        pl.BlockSpec(w0b.shape, lambda b, i: (0, 0)),
        pl.BlockSpec(b0.shape, lambda b, i: (0, 0)),
    ]
    in_specs += [pl.BlockSpec(w.shape, lambda b, i: (0, 0)) for w in rest_w]
    in_specs += [pl.BlockSpec(bb.shape, lambda b, i: (0, 0)) for bb in rest_b]
    out_spec = pl.BlockSpec((1, c_out, tile_n), lambda b, i: (b, 0, i))

    # Explicit VMEM limit from an estimate; never assume 128 MiB (v7x has 64).
    fb = 4
    dense = 4 * m_pad * tile_n * fb
    resident = 2 * (m_pad * _COORD_PAD + c_h0 * m_pad) * fb
    tiles = 2 * (_COORD_PAD + C1 + c_out) * tile_n * fb
    wts = 2 * fb * sum(int(a.size) for a in ([w0b, b0] + rest_w + rest_b))
    vmem_limit = int(min(64 << 20, max(32 << 20, 2 * (dense + resident + tiles + wts))))

    kernel = _make_kernel(num_rest, m_pad, m, mlp_dtype)
    out = pl.pallas_call(
        kernel,
        out_shape=jax.ShapeDtypeStruct((B, c_out, n_pad), jnp.float32),
        grid_spec=pltpu.PrefetchScalarGridSpec(
            num_scalar_prefetch=0,
            grid=(B, n_pad // tile_n),
            in_specs=in_specs,
            out_specs=out_spec,
        ),
        compiler_params=pltpu.CompilerParams(
            dimension_semantics=("parallel", "parallel"),
            vmem_limit_bytes=vmem_limit),
    )(known_p, unknown_t, unk_feats_p, wk, w0b, b0, *rest_w, *rest_b)

    return out[:, :, :n]


def _reference(unknown, known, unknow_feats, known_feats, weights, biases):
    """Pure-JAX reference of the PyTorch forward (eval-mode BN folded)."""
    d = jnp.sqrt(jnp.sum(
        (unknown[:, :, None, :] - known[:, None, :, :]) ** 2, axis=-1))  # (B,n,m)
    neg_top, idx = jax.lax.top_k(-d, 3)                                  # (B,n,3)
    dist = -neg_top
    dist_recip = 1.0 / (dist + 1e-8)
    norm = jnp.sum(dist_recip, axis=2, keepdims=True)
    weight = dist_recip / norm                                           # (B,n,3)

    featsT = jnp.transpose(known_feats, (0, 2, 1))                       # (B,m,C2)

    def interp_one(fT, ix, w):
        g = fT[ix]                                                       # (n,3,C2)
        return jnp.sum(g * w[..., None], axis=1)                         # (n,C2)

    interp = jax.vmap(interp_one)(featsT, idx, weight)                   # (B,n,C2)
    interp = jnp.transpose(interp, (0, 2, 1))                            # (B,C2,n)

    new = jnp.concatenate([interp, unknow_feats], axis=1)                # (B,C,n)
    for w, b in zip(weights, biases):
        new = jnp.maximum(
            jnp.einsum("oi,bin->bon", w, new) + b[None], 0.0)
    return new


if __name__ == "__main__":
    key = jax.random.PRNGKey(0)
    B, n, m = 2, 64, 32
    C1, C2 = 8, 8
    mlp = [C1 + C2, 32, 16]          # SharedMLP channel sizes

    k1, k2, k3, k4, k5 = jax.random.split(key, 5)
    unknown = jax.random.normal(k1, (B, n, 3), dtype=jnp.float32)
    known = jax.random.normal(k2, (B, m, 3), dtype=jnp.float32)
    unknow_feats = jax.random.normal(k3, (B, C1, n), dtype=jnp.float32)
    known_feats = jax.random.normal(k4, (B, C2, m), dtype=jnp.float32)

    # Deterministic Conv2d(1x1, bias=False) + BatchNorm2d(eval) params, folded.
    weights, biases = [], []
    wkeys = jax.random.split(k5, len(mlp) - 1)
    bn_eps = 1e-5
    for li in range(len(mlp) - 1):
        cin, cout = mlp[li], mlp[li + 1]
        w = 0.1 * jax.random.normal(wkeys[li], (cout, cin), dtype=jnp.float32)
        gamma = jnp.ones((cout,), jnp.float32)
        beta = jnp.zeros((cout,), jnp.float32)
        run_mean = jnp.zeros((cout,), jnp.float32)
        run_var = jnp.ones((cout,), jnp.float32)
        scale = gamma / jnp.sqrt(run_var + bn_eps)
        shift = beta - run_mean * scale
        weights.append(w * scale[:, None])            # folded conv weight
        biases.append(shift.reshape(cout, 1))         # folded bias (conv has no bias)

    out = pointnet_fp_forward(unknown, known, unknow_feats, known_feats,
                              weights, biases)
    out = jax.block_until_ready(out)

    ref = _reference(unknown, known, unknow_feats, known_feats, weights, biases)
    assert out.shape == (B, mlp[-1], n), out.shape
    assert jnp.allclose(out, ref, rtol=1e-4, atol=1e-4), (
        float(jnp.max(jnp.abs(out - ref))))

    print("KERNEL_OK")
</pallas_src>

<mosaic_0001>
module attributes {stable_mosaic.version = 11 : i64} {
  func.func @kernel(%arg0: i32, %arg1: i32, %arg2: memref<1x128x8xf32, #tpu.memory_space<vmem>>, %arg3: memref<1x8x128xf32, #tpu.memory_space<vmem>>, %arg4: memref<1x8x128xf32, #tpu.memory_space<vmem>>, %arg5: memref<1x32x128xf32, #tpu.memory_space<vmem>>, %arg6: memref<32x8xf32, #tpu.memory_space<vmem>>, %arg7: memref<32x1xf32, #tpu.memory_space<vmem>>, %arg8: memref<16x32xf32, #tpu.memory_space<vmem>>, %arg9: memref<16x1xf32, #tpu.memory_space<vmem>>, %arg10: memref<1x16x128xf32, #tpu.memory_space<vmem>>) attributes {dimension_semantics = [#tpu.dimension_semantics<parallel>, #tpu.dimension_semantics<parallel>], iteration_bounds = array<i64: 2, 1>, scalar_prefetch = 0 : i64, scratch_operands = 0 : i64, tpu.core_type = #tpu.core_type<tc>, window_params = [{transform_indices = @transform_0, window_bounds = array<i64: 1, 128, 8>}, {transform_indices = @transform_1, window_bounds = array<i64: 1, 8, 128>}, {transform_indices = @transform_2, window_bounds = array<i64: 1, 8, 128>}, {transform_indices = @transform_3, window_bounds = array<i64: 1, 32, 128>}, {pipeline_mode = #tpu.pipeline_mode<synchronous>, transform_indices = @transform_4, window_bounds = array<i64: 32, 8>}, {pipeline_mode = #tpu.pipeline_mode<synchronous>, transform_indices = @transform_5, window_bounds = array<i64: 32, 1>}, {pipeline_mode = #tpu.pipeline_mode<synchronous>, transform_indices = @transform_6, window_bounds = array<i64: 16, 32>}, {pipeline_mode = #tpu.pipeline_mode<synchronous>, transform_indices = @transform_7, window_bounds = array<i64: 16, 1>}, {transform_indices = @transform_8, window_bounds = array<i64: 1, 16, 128>}]} {
    %c0 = arith.constant 0 : index
    %c0_0 = arith.constant 0 : index
    %c0_1 = arith.constant 0 : index
    %0 = vector.load %arg2[%c0, %c0_0, %c0_1] : memref<1x128x8xf32, #tpu.memory_space<vmem>>, vector<1x128x8xf32>
    %1 = vector.shape_cast %0 : vector<1x128x8xf32> to vector<128x8xf32>
    %c0_2 = arith.constant 0 : index
    %c0_3 = arith.constant 0 : index
    %c0_4 = arith.constant 0 : index
    %2 = vector.load %arg3[%c0_2, %c0_3, %c0_4] : memref<1x8x128xf32, #tpu.memory_space<vmem>>, vector<1x8x128xf32>
    %3 = vector.shape_cast %2 : vector<1x8x128xf32> to vector<8x128xf32>
    %4 = arith.mulf %1, %1 : vector<128x8xf32>
    %cst = arith.constant dense<0.000000e+00> : vector<128xf32>
    %5 = vector.multi_reduction <add>, %4, %cst [1] : vector<128x8xf32> to vector<128xf32>
    %6 = vector.shape_cast %5 : vector<128xf32> to vector<128x1xf32>
    %7 = arith.mulf %3, %3 : vector<8x128xf32>
    %cst_5 = arith.constant dense<0.000000e+00> : vector<128xf32>
    %8 = vector.multi_reduction <add>, %7, %cst_5 [0] : vector<8x128xf32> to vector<128xf32>
    %9 = vector.shape_cast %8 : vector<128xf32> to vector<1x128xf32>
    %cst_6 = arith.constant dense<0.000000e+00> : vector<128x128xf32>
    %10 = tpu.matmul %1, %3, %cst_6 {dimension_numbers = #tpu.dot_dimension_numbers<[1], [0], [0], [1], [0, 0, 1, 1], [], []>} : vector<128x8xf32>, vector<8x128xf32>, vector<128x128xf32> -> vector<128x128xf32>
    %11 = vector.broadcast %6 : vector<128x1xf32> to vector<128x128xf32>
    %12 = vector.broadcast %9 : vector<1x128xf32> to vector<128x128xf32>
    %13 = arith.addf %11, %12 : vector<128x128xf32>
    %cst_7 = arith.constant 2.000000e+00 : f32
    %14 = vector.broadcast %cst_7 : f32 to vector<128x128xf32>
    %15 = arith.mulf %14, %10 : vector<128x128xf32>
    %16 = arith.subf %13, %15 : vector<128x128xf32>
    %17 = tpu.iota {dimensions = array<i32: 0>} : vector<128x128xi32>
    %c32_i32 = arith.constant 32 : i32
    %18 = vector.broadcast %c32_i32 : i32 to vector<128x128xi32>
    %19 = arith.cmpi sge, %17, %18 : vector<128x128xi32>
    %cst_8 = arith.constant 1.000000e+30 : f32
    %20 = vector.broadcast %cst_8 : f32 to vector<128x128xf32>
    %21 = arith.select %19, %20, %16 : vector<128x128xi1>, vector<128x128xf32>
    %cst_9 = arith.constant 0.000000e+00 : f32
    %22 = vector.broadcast %cst_9 : f32 to vector<128x128xf32>
    %cst_10 = arith.constant 0.000000e+00 : f32
    %23 = vector.broadcast %cst_10 : f32 to vector<1x128xf32>
    %cst_11 = arith.constant dense<0x7F800000> : vector<128xf32>
    %24 = vector.multi_reduction <minimumf>, %21, %cst_11 [0] : vector<128x128xf32> to vector<128xf32>
    %25 = vector.shape_cast %24 : vector<128xf32> to vector<1x128xf32>
    %26 = vector.broadcast %25 : vector<1x128xf32> to vector<128x128xf32>
    %27 = arith.cmpf ole, %21, %26 : vector<128x128xf32>
    %c128_i32 = arith.constant 128 : i32
    %28 = vector.broadcast %c128_i32 : i32 to vector<128x128xi32>
    %29 = arith.select %27, %17, %28 : vector<128x128xi1>, vector<128x128xi32>
    %cst_12 = arith.constant dense<2147483647> : vector<128xi32>
    %30 = vector.multi_reduction <minsi>, %29, %cst_12 [0] : vector<128x128xi32> to vector<128xi32>
    %31 = vector.shape_cast %30 : vector<128xi32> to vector<1x128xi32>
    %cst_13 = arith.constant 0.000000e+00 : f32
    %32 = vector.broadcast %cst_13 : f32 to vector<1x128xf32>
    %33 = arith.maximumf %25, %32 : vector<1x128xf32>
    %34 = math.sqrt %33 : vector<1x128xf32>
    %cst_14 = arith.constant 9.99999993E-9 : f32
    %35 = vector.broadcast %cst_14 : f32 to vector<1x128xf32>
    %36 = arith.addf %34, %35 : vector<1x128xf32>
    %cst_15 = arith.constant 1.000000e+00 : f32
    %37 = vector.broadcast %cst_15 : f32 to vector<1x128xf32>
    %38 = arith.divf %37, %36 : vector<1x128xf32>
    %39 = vector.broadcast %31 : vector<1x128xi32> to vector<128x128xi32>
    %40 = arith.cmpi eq, %17, %39 : vector<128x128xi32>
    %cst_16 = arith.constant 0.000000e+00 : f32
    %41 = vector.shape_cast %38 : vector<1x128xf32> to vector<1x128xf32>
    %42 = vector.broadcast %41 : vector<1x128xf32> to vector<128x128xf32>
    %43 = vector.broadcast %cst_16 : f32 to vector<128x128xf32>
    %44 = arith.select %40, %42, %43 : vector<128x128xi1>, vector<128x128xf32>
    %45 = arith.addf %22, %44 : vector<128x128xf32>
    %46 = arith.addf %23, %38 : vector<1x128xf32>
    %cst_17 = arith.constant 1.000000e+30 : f32
    %47 = vector.broadcast %cst_17 : f32 to vector<128x128xf32>
    %48 = arith.select %40, %47, %21 : vector<128x128xi1>, vector<128x128xf32>
    %cst_18 = arith.constant dense<0x7F800000> : vector<128xf32>
    %49 = vector.multi_reduction <minimumf>, %48, %cst_18 [0] : vector<128x128xf32> to vector<128xf32>
    %50 = vector.shape_cast %49 : vector<128xf32> to vector<1x128xf32>
    %51 = vector.broadcast %50 : vector<1x128xf32> to vector<128x128xf32>
    %52 = arith.cmpf ole, %48, %51 : vector<128x128xf32>
    %c128_i32_19 = arith.constant 128 : i32
    %53 = vector.broadcast %c128_i32_19 : i32 to vector<128x128xi32>
    %54 = arith.select %52, %17, %53 : vector<128x128xi1>, vector<128x128xi32>
    %cst_20 = arith.constant dense<2147483647> : vector<128xi32>
    %55 = vector.multi_reduction <minsi>, %54, %cst_20 [0] : vector<128x128xi32> to vector<128xi32>
    %56 = vector.shape_cast %55 : vector<128xi32> to vector<1x128xi32>
    %cst_21 = arith.constant 0.000000e+00 : f32
    %57 = vector.broadcast %cst_21 : f32 to vector<1x128xf32>
    %58 = arith.maximumf %50, %57 : vector<1x128xf32>
    %59 = math.sqrt %58 : vector<1x128xf32>
    %cst_22 = arith.constant 9.99999993E-9 : f32
    %60 = vector.broadcast %cst_22 : f32 to vector<1x128xf32>
    %61 = arith.addf %59, %60 : vector<1x128xf32>
    %cst_23 = arith.constant 1.000000e+00 : f32
    %62 = vector.broadcast %cst_23 : f32 to vector<1x128xf32>
    %63 = arith.divf %62, %61 : vector<1x128xf32>
    %64 = vector.broadcast %56 : vector<1x128xi32> to vector<128x128xi32>
    %65 = arith.cmpi eq, %17, %64 : vector<128x128xi32>
    %cst_24 = arith.constant 0.000000e+00 : f32
    %66 = vector.shape_cast %63 : vector<1x128xf32> to vector<1x128xf32>
    %67 = vector.broadcast %66 : vector<1x128xf32> to vector<128x128xf32>
    %68 = vector.broadcast %cst_24 : f32 to vector<128x128xf32>
    %69 = arith.select %65, %67, %68 : vector<128x128xi1>, vector<128x128xf32>
    %70 = arith.addf %45, %69 : vector<128x128xf32>
    %71 = arith.addf %46, %63 : vector<1x128xf32>
    %cst_25 = arith.constant 1.000000e+30 : f32
    %72 = vector.broadcast %cst_25 : f32 to vector<128x128xf32>
    %73 = arith.select %65, %72, %48 : vector<128x128xi1>, vector<128x128xf32>
    %cst_26 = arith.constant dense<0x7F800000> : vector<128xf32>
    %74 = vector.multi_reduction <minimumf>, %73, %cst_26 [0] : vector<128x128xf32> to vector<128xf32>
    %75 = vector.shape_cast %74 : vector<128xf32> to vector<1x128xf32>
    %76 = vector.broadcast %75 : vector<1x128xf32> to vector<128x128xf32>
    %77 = arith.cmpf ole, %73, %76 : vector<128x128xf32>
    %c128_i32_27 = arith.constant 128 : i32
    %78 = vector.broadcast %c128_i32_27 : i32 to vector<128x128xi32>
    %79 = arith.select %77, %17, %78 : vector<128x128xi1>, vector<128x128xi32>
    %cst_28 = arith.constant dense<2147483647> : vector<128xi32>
    %80 = vector.multi_reduction <minsi>, %79, %cst_28 [0] : vector<128x128xi32> to vector<128xi32>
    %81 = vector.shape_cast %80 : vector<128xi32> to vector<1x128xi32>
    %cst_29 = arith.constant 0.000000e+00 : f32
    %82 = vector.broadcast %cst_29 : f32 to vector<1x128xf32>
    %83 = arith.maximumf %75, %82 : vector<1x128xf32>
    %84 = math.sqrt %83 : vector<1x128xf32>
    %cst_30 = arith.constant 9.99999993E-9 : f32
    %85 = vector.broadcast %cst_30 : f32 to vector<1x128xf32>
    %86 = arith.addf %84, %85 : vector<1x128xf32>
    %cst_31 = arith.constant 1.000000e+00 : f32
    %87 = vector.broadcast %cst_31 : f32 to vector<1x128xf32>
    %88 = arith.divf %87, %86 : vector<1x128xf32>
    %89 = vector.broadcast %81 : vector<1x128xi32> to vector<128x128xi32>
    %90 = arith.cmpi eq, %17, %89 : vector<128x128xi32>
    %cst_32 = arith.constant 0.000000e+00 : f32
    %91 = vector.shape_cast %88 : vector<1x128xf32> to vector<1x128xf32>
    %92 = vector.broadcast %91 : vector<1x128xf32> to vector<128x128xf32>
    %93 = vector.broadcast %cst_32 : f32 to vector<128x128xf32>
    %94 = arith.select %90, %92, %93 : vector<128x128xi1>, vector<128x128xf32>
    %95 = arith.addf %70, %94 : vector<128x128xf32>
    %96 = arith.addf %71, %88 : vector<1x128xf32>
    %cst_33 = arith.constant 1.000000e+00 : f32
    %97 = vector.broadcast %cst_33 : f32 to vector<1x128xf32>
    %98 = arith.divf %97, %96 : vector<1x128xf32>
    %99 = vector.broadcast %98 : vector<1x128xf32> to vector<128x128xf32>
    %100 = arith.mulf %95, %99 : vector<128x128xf32>
    %c0_34 = arith.constant 0 : index
    %c0_35 = arith.constant 0 : index
    %c0_36 = arith.constant 0 : index
    %101 = vector.load %arg5[%c0_34, %c0_35, %c0_36] : memref<1x32x128xf32, #tpu.memory_space<vmem>>, vector<1x32x128xf32>
    %102 = vector.shape_cast %101 : vector<1x32x128xf32> to vector<32x128xf32>
    %cst_37 = arith.constant dense<0.000000e+00> : vector<32x128xf32>
    %103 = tpu.matmul %102, %100, %cst_37 {dimension_numbers = #tpu.dot_dimension_numbers<[1], [0], [0], [1], [0, 0, 1, 1], [], []>} : vector<32x128xf32>, vector<128x128xf32>, vector<32x128xf32> -> vector<32x128xf32>
    %c0_38 = arith.constant 0 : index
    %c0_39 = arith.constant 0 : index
    %104 = vector.load %arg6[%c0_38, %c0_39] : memref<32x8xf32, #tpu.memory_space<vmem>>, vector<32x8xf32>
    %c0_40 = arith.constant 0 : index
    %c0_41 = arith.constant 0 : index
    %c0_42 = arith.constant 0 : index
    %105 = vector.load %arg4[%c0_40, %c0_41, %c0_42] : memref<1x8x128xf32, #tpu.memory_space<vmem>>, vector<1x8x128xf32>
    %106 = vector.shape_cast %105 : vector<1x8x128xf32> to vector<8x128xf32>
    %cst_43 = arith.constant dense<0.000000e+00> : vector<32x128xf32>
    %107 = tpu.matmul %104, %106, %cst_43 {dimension_numbers = #tpu.dot_dimension_numbers<[1], [0], [0], [1], [0, 0, 1, 1], [], []>} : vector<32x8xf32>, vector<8x128xf32>, vector<32x128xf32> -> vector<32x128xf32>
    %108 = arith.addf %103, %107 : vector<32x128xf32>
    %c0_44 = arith.constant 0 : index
    %c0_45 = arith.constant 0 : index
    %109 = vector.load %arg7[%c0_44, %c0_45] : memref<32x1xf32, #tpu.memory_space<vmem>>, vector<32x1xf32>
    %110 = vector.broadcast %109 : vector<32x1xf32> to vector<32x128xf32>
    %111 = arith.addf %108, %110 : vector<32x128xf32>
    %cst_46 = arith.constant 0.000000e+00 : f32
    %112 = vector.broadcast %cst_46 : f32 to vector<32x128xf32>
    %113 = arith.maximumf %111, %112 : vector<32x128xf32>
    %c0_47 = arith.constant 0 : index
    %c0_48 = arith.constant 0 : index
    %114 = vector.load %arg8[%c0_47, %c0_48] : memref<16x32xf32, #tpu.memory_space<vmem>>, vector<16x32xf32>
    %cst_49 = arith.constant dense<0.000000e+00> : vector<16x128xf32>
    %115 = tpu.matmul %114, %113, %cst_49 {dimension_numbers = #tpu.dot_dimension_numbers<[1], [0], [0], [1], [0, 0, 1, 1], [], []>} : vector<16x32xf32>, vector<32x128xf32>, vector<16x128xf32> -> vector<16x128xf32>
    %c0_50 = arith.constant 0 : index
    %c0_51 = arith.constant 0 : index
    %116 = vector.load %arg9[%c0_50, %c0_51] : memref<16x1xf32, #tpu.memory_space<vmem>>, vector<16x1xf32>
    %117 = vector.broadcast %116 : vector<16x1xf32> to vector<16x128xf32>
    %118 = arith.addf %115, %117 : vector<16x128xf32>
    %cst_52 = arith.constant 0.000000e+00 : f32
    %119 = vector.broadcast %cst_52 : f32 to vector<16x128xf32>
    %120 = arith.maximumf %118, %119 : vector<16x128xf32>
    %c0_53 = arith.constant 0 : index
    %c0_54 = arith.constant 0 : index
    %c0_55 = arith.constant 0 : index
    %121 = vector.load %arg10[%c0_53, %c0_54, %c0_55] : memref<1x16x128xf32, #tpu.memory_space<vmem>>, vector<1x16x128xf32>
    %122 = vector.shape_cast %121 : vector<1x16x128xf32> to vector<16x128xf32>
    %123 = vector.shape_cast %120 : vector<16x128xf32> to vector<1x16x128xf32>
    tpu.vector_store %arg10[%c0_53, %c0_54, %c0_55], %123 {strides = array<i32>} : memref<1x16x128xf32, #tpu.memory_space<vmem>>, vector<1x16x128xf32>,
    return
  }
  func.func @transform_0(%arg0: i32, %arg1: i32) -> (i32, i32, i32) {
    %c0_i32 = arith.constant 0 : i32
    %c0_i32_0 = arith.constant 0 : i32
    %c0_i32_1 = arith.constant 0 : i32
    return %arg0, %c0_i32, %c0_i32_0 : i32, i32, i32
  }
  func.func @transform_1(%arg0: i32, %arg1: i32) -> (i32, i32, i32) {
    %c0_i32 = arith.constant 0 : i32
    %c0_i32_0 = arith.constant 0 : i32
    return %arg0, %c0_i32, %arg1 : i32, i32, i32
  }
  func.func @transform_2(%arg0: i32, %arg1: i32) -> (i32, i32, i32) {
    %c0_i32 = arith.constant 0 : i32
    %c0_i32_0 = arith.constant 0 : i32
    return %arg0, %c0_i32, %arg1 : i32, i32, i32
  }
  func.func @transform_3(%arg0: i32, %arg1: i32) -> (i32, i32, i32) {
    %c0_i32 = arith.constant 0 : i32
    %c0_i32_0 = arith.constant 0 : i32
    %c0_i32_1 = arith.constant 0 : i32
    return %arg0, %c0_i32, %c0_i32_0 : i32, i32, i32
  }
  func.func @transform_4(%arg0: i32, %arg1: i32) -> (i32, i32) {
    %c0_i32 = arith.constant 0 : i32
    %c0_i32_0 = arith.constant 0 : i32
    %c0_i32_1 = arith.constant 0 : i32
    return %c0_i32, %c0_i32_0 : i32, i32
  }
  func.func @transform_5(%arg0: i32, %arg1: i32) -> (i32, i32) {
    %c0_i32 = arith.constant 0 : i32
    %c0_i32_0 = arith.constant 0 : i32
    %c0_i32_1 = arith.constant 0 : i32
    return %c0_i32, %c0_i32_0 : i32, i32
  }
  func.func @transform_6(%arg0: i32, %arg1: i32) -> (i32, i32) {
    %c0_i32 = arith.constant 0 : i32
    %c0_i32_0 = arith.constant 0 : i32
    %c0_i32_1 = arith.constant 0 : i32
    return %c0_i32, %c0_i32_0 : i32, i32
  }
  func.func @transform_7(%arg0: i32, %arg1: i32) -> (i32, i32) {
    %c0_i32 = arith.constant 0 : i32
    %c0_i32_0 = arith.constant 0 : i32
    %c0_i32_1 = arith.constant 0 : i32
    return %c0_i32, %c0_i32_0 : i32, i32
  }
  func.func @transform_8(%arg0: i32, %arg1: i32) -> (i32, i32, i32) {
    %c0_i32 = arith.constant 0 : i32
    %c0_i32_0 = arith.constant 0 : i32
    return %arg0, %c0_i32, %arg1 : i32, i32, i32
  }
}

</mosaic_0001>

<bundles_post_ra>
// kernel: tpu_custom_call.1
= control target key start
LH: loop header
LB: loop body
LE: loop exit
PB: predicated region body
PF: predicated region fallthrough
CT: control target
= control target key end

     0   :  { %13 = vsyncpa [#allocation3], 0  ;;  %s2912_s0 = inlined_call_operand.vmem [shape: f32[2,128,8], index: 0, kind: input, shape index: {}]   ;;  %s2913_s1 = inlined_call_operand.vmem [shape: f32[2,8,128], index: 1, kind: input, shape index: {}]   ;;  %s2914_s2 = inlined_call_operand.vmem [shape: f32[2,8,128], index: 2, kind: input, shape index: {}]   ;;  %s2915_s3 = inlined_call_operand.vmem [shape: f32[2,32,128], index: 3, kind: input, shape index: {}]   ;;  %s2916_s4 = inlined_call_operand.vmem [shape: f32[32,8], index: 4, kind: input, shape index: {}]   ;;  %s2917_s5 = inlined_call_operand.vmem [shape: f32[32,1], index: 5, kind: input, shape index: {}]   ;;  %s2918_s6 = inlined_call_operand.vmem [shape: f32[16,32], index: 6, kind: input, shape index: {}]   ;;  %s2919_s7 = inlined_call_operand.vmem [shape: f32[16,1], index: 7, kind: input, shape index: {}]   ;;  %s2920_s8 = inlined_call_operand.hbm [shape: f32[2,16,128], index: 8, kind: output, shape index: {}]  }
   0x1   :  { %15 = vsyncpa [#allocation3 + $0x1], 0  ;;  %s2141_s27 = smov 0   ;;  %s2143_s28 = smov 0  }
   0x2   :  { %s2145_s29 = smov 0   ;;  %s2147_s30 = smov 0  }
   0x3   :  { %s2149_s9 = smov 0   ;;  %s2151_s10 = smov 0  }
   0x4 LB: > { %s1731_s11 = sadd.s32 4294967295, %s2090_s10   ;;  %s1732_s12 = sadd.s32 4294967294, %s2090_s10   ;;  %s2090_s10 = sphi %s2151_s10, %s21_s10   ;;  %s2086_s9 = sphi %s2149_s9, %s2935_s9   ;;  %s2082_s30 = sphi %s2147_s30, %s2934_s30   ;;  %s2078_s29 = sphi %s2145_s29, %s2933_s29   ;;  %s2074_s28 = sphi %s2143_s28, %s2932_s28   ;;  %s2070_s27 = sphi %s2141_s27, %s2931_s27  }
   0x5   : > { %s33_s13 = sadd.s32 1, %s2086_s9  ;;  %s234_s14 = sadd.s32 1, %s2078_s29 }
   0x6   : > { %p35_p0 = scmp.ge.s32.totalorder %s33_s13, 2  ;;  %p244_p1 = scmp.ne.s32.totalorder %s2078_s29, %s2074_s28 }
   0x7   : > { %p245_p2 = scmp.eq.s32.totalorder %s1731_s11, 1  ;;  %p250_p3 = scmp.ne.s32.totalorder %s2074_s28, %s2070_s27 }
   0x8   : > { %s2937_s13 = smov (%p35_p0, %s33_s13), 0  ;;  %p251_p5 = scmp.eq.s32.totalorder %s1732_s12, 1 }
   0x9   : > { %p2181_p4 = por %p245_p2, %p244_p1  ;;  %s229_s16 = ssub.s32 %s2086_s9, %s2937_s13 }
   0xa   : > { %p1735_p6 = scmp.ge.s32.totalorder %s2090_s10, 1  ;;  %p232_p7 = scmp.eq.s32.totalorder %s229_s16, 0 }
   0xb   : > { %p2188_p8 = por %p251_p5, %p250_p3  ;;  %p317_p9 = scmp.lt.s32.totalorder %s2090_s10, 3 }
   0xc   : > { %s2194_s18 = scalar_select %p232_p7, %s2078_s29, %s234_s14  }
   0xd   : > { %p318_p10 = pnand %p1735_p6, %p317_p9 }
   0xf   : > { %321 = sbr.rel (%p318_p10) target bundleno = 881 (0x371), region = 52 }
  0x14   : > { %p370_p11 = scmp.lt.s32.totalorder %s2082_s30, 1  ;;  %vm427_vm0 = vcmask 64512   ;;  %v724_v55 = vlaneseq  ;;  %s1808_s14 = sshll.u32 %s2082_s30, 8 }
  0x16   : > { %s2198_s19 = scalar_select %p370_p11, %s2082_s30, 1  ;;  %v2236_v58 = vshrl.u32 %v724_v55, 7 }
  0x17   : > { %s2093_s30 = smov [#allocation2]  }
  0x18   : > { %s1806_s20 = sshll.u32 %s2198_s19, 7  ;;  %s1739_s21 = sshll.u32 %s2198_s19, 3  ;;  %v2239_v61 = vadd.s32 8, %v2236_v58  ;;  %v2242_v62 = vadd.s32 16, %v2236_v58  ;;  %v2245_v63 = vadd.s32 24, %v2236_v58 }
  0x19   : > { %s2205_s24 = scalar_lea.vmem %s2912_s0, %s1806_s20  ;;  %s381_s11 = scalar_lea.vmem %s2913_s1, %s1739_s21 }
  0x1a   : > { %v410_v0 = vld [vmem:[%s381_s11] sm:$0xff]  ;;  %v395_v2 = vld [vmem:[%s2205_s24 + $0x8] sm:$0xff]  ;;  %v396_v4 = vld [vmem:[%s2205_s24 + $0x10] sm:$0xff]  ;;  %s388_s16 = scalar_lea.vmem %s2914_s2, %s1739_s21  ;;  %s1807_s25 = sshll.u32 %s2198_s19, 5 }
  0x1b   : > { %v394_v1 = vld [vmem:[%s2205_s24] sm:$0xff]  ;;  %1857 = vmatprep.subr.mxu0 %v410_v0  ;;  %v397_v5 = vld [vmem:[%s2205_s24 + $0x18] sm:$0xff]  ;;  %v412_v6 = vmul.f32 %v395_v2, %v395_v2  ;;  %v413_v7 = vmul.f32 %v396_v4, %v396_v4  ;;  %v476_v13 = vmul.f32 %v410_v0, %v410_v0  ;;  %s2539_s11 = scalar_lea.vmem %s2915_s3, %s1807_s25  ;;  %s367_s25 = sand.u32 1, %s2074_s28  }
  0x1c   : > { %v411_v3 = vmul.f32 %v394_v1, %v394_v1  ;;  %1859 = vmatprep.mubr.msk.f32.mxu0 %vm427_vm0, %v394_v1  ;;  %1858 = vmatpush3.msra.mxu0 %v410_v0  ;;  %v414_v8 = vmul.f32 %v397_v5, %v397_v5  ;;  %v2248_v0 = vadd.s32 32, %v2236_v58  ;;  %s1736_s21 = sshll.u32 %s367_s25, 4  ;;  %s2865_s19 = scalar_lea.hbm %s2920_s8, %s1808_s14 }
  0x1d   : > { %1860 = vmatmul.mubr.msk.f32.vlgmr.msra.gmra.mxu0 %vm427_vm0, %v395_v2  ;;  %v434_v10 = vsel %vm427_vm0, %v413_v7, 0.0  ;;  %v431_v11 = vsel %vm427_vm0, %v412_v6, 0.0  ;;  %v477_v14 = vrot.slane %v476_v13, 4  ;;  %v2251_v2 = vadd.s32 40, %v2236_v58  ;;  %s369_s26 = scalar_lea.vmem [#allocation2], %s1736_s21  ;;  %s2867_s22 = scalar_lea.sflag [#allocation3], %s367_s25 }
  0x1e   : > { %v428_v9 = vsel %vm427_vm0, %v411_v3, 0.0  ;;  %1862 = vmatprep.mubr.msk.f32.mxu0 %vm427_vm0, %v396_v4  ;;  %435 = vadd.xlane.f32.xlu1 %v434_v10  ;;  %v437_v12 = vsel %vm427_vm0, %v414_v8, 0.0  ;;  %v2254_v3 = vadd.s32 48, %v2236_v58  ;;  %v2257_v4 = vadd.s32 56, %v2236_v58  ;;  %s1617_s12 = sshll.u32 %s369_s26, 4  ;;  %s2860_s12 = int_to_ptr.vmem [resolvable:$true] %s1617_s12 }
  0x1f   : > { %429 = vadd.xlane.f32.xlu0 %v428_v9  ;;  %v478_v15 = vadd.f32 %v477_v14, %v476_v13  ;;  %v2263_v6 = vadd.s32 72, %v2236_v58  ;;  %v2266_v7 = vadd.s32 80, %v2236_v58  ;;  %v2269_v8 = vadd.s32 88, %v2236_v58  ;;  %s2014_s23 = scalar_lea.vmem %s2860_s12, 256 }
  0x20   : > { %v2272_v10 = vadd.s32 96, %v2236_v58  ;;  %v2281_v13 = vadd.s32 120, %v2236_v58  ;;  %p2015_p12 = scmp.ne.s32.totalorder %s2860_s12, %s2014_s23 }
  0x21   : > { %1863 = vmatmul.mubr.msk.f32.gmra.mxu0 %vm427_vm0, %v397_v5  ;;  %v479_v16 = vrot.slane %v478_v15, 2  ;;  %v2260_v5 = vadd.s32 64, %v2236_v58 }
  0x22   : > { %438 = vadd.xlane.f32.xlu1 %v437_v12  ;;  %v2278_v12 = vadd.s32 112, %v2236_v58  ;;  %p2016_p13 = pnand %p2015_p12, %p2181_p4 }
  0x23   : > { %432 = vadd.xlane.f32.xlu0 %v431_v11  ;;  %v480_v17 = vadd.f32 %v479_v16, %v478_v15  ;;  %v2275_v11 = vadd.s32 104, %v2236_v58 }
  0x24   : > { %p2017_p0 = pneg %p2016_p13 }
  0x25   : > { %v481_v19 = vrot.slane %v480_v17, 1 }
  0x27   : > { %v482_v21 = vadd.f32 %v481_v19, %v480_v17 }
  0xa7   : > { %v436_v20 = vpop.xlane.xlu1 %435 }
  0xa8   : > { %v430_v18 = vpop.xlane.xlu0 %429  ;;  %v678_v35 = vadd.f32 %v482_v21, %v436_v20 }
  0xa9   : > { %v676_v26 = vadd.f32 %v482_v21, %v430_v18 }
  0xab   : > { %v439_v25 = vpop.xlane.xlu1 %438 }
  0xac   : > { %v433_v22 = vpop.xlane.xlu0 %432  ;;  %v679_v31 = vadd.f32 %v482_v21, %v439_v25 }
  0xad   : > { %v677_v23 = vadd.f32 %v482_v21, %v433_v22 }
  0xdd   : > { %v1861_v24 = vpop.f32.mrf.mxu0 }
  0xde   : > { %v693_v27 = vmul.f32 2.0, %v1861_v24 }
  0xdf   : > { %v597_v28 = vpop.f32.mrf.mxu0 }
  0xe0   : > { %v2224_v29 = vsub.f32 %v677_v23, %v693_v27  ;;  %v692_v30 = vmul.f32 2.0, %v597_v28 }
  0xe1   : > { %v1864_v32 = vpop.f32.mrf.mxu0 }
  0xe2   : > { %v2226_v33 = vsub.f32 %v676_v26, %v692_v30  ;;  %v695_v34 = vmul.f32 2.0, %v1864_v32  ;;  %v774_v37 = vmin.f32 %v2224_v29, 1e+30 }
  0xe3   : > { %v607_v36 = vpop.f32.mrf.mxu0 }
  0xe4   : > { %v773_v38 = vmin.f32 %v2226_v33, 1e+30  ;;  %v2230_v39 = vsub.f32 %v679_v31, %v695_v34  ;;  %v694_v40 = vmul.f32 2.0, %v607_v36  ;;  %v778_v44 = vmin.f32 %v774_v37, 1e+30 }
  0xe6   : > { %v777_v41 = vmin.f32 %v773_v38, 1e+30  ;;  %v776_v42 = vmin.f32 %v2230_v39, 1e+30  ;;  %v2233_v43 = vsub.f32 %v678_v35, %v694_v40  ;;  %v782_v49 = vmin.f32 %v778_v44, 1e+30 }
  0xe8   : > { %v780_v45 = vmin.f32 %v776_v42, 1e+30  ;;  %v775_v46 = vmin.f32 %v2233_v43, 1e+30  ;;  %v781_v47 = vmin.f32 %v777_v41, 1e+30 }
  0xea   : > { %v779_v48 = vmin.f32 %v775_v46, 1e+30  ;;  %v784_v50 = vmin.f32 %v780_v45, 1e+30  ;;  %v785_v52 = vmin.f32 %v781_v47, %v782_v49 }
  0xec   : > { %v783_v51 = vmin.f32 %v779_v48, 1e+30 }
  0xee   : > { %v786_v53 = vmin.f32 %v783_v51, %v784_v50 }
  0xf0   : > { %v787_v54 = vmin.f32 %v785_v52, %v786_v53 }
  0xf2   : > { %v788_v56 = vrot.slane %v787_v54, 4 }
  0xf4   : > { %v789_v57 = vmin.f32 %v787_v54, %v788_v56 }
  0xf6   : > { %v790_v59 = vrot.slane %v789_v57, 2 }
  0xf8   : > { %v791_v60 = vmin.f32 %v789_v57, %v790_v59 }
  0xfa   : > { %v792_v1 = vrot.slane %v791_v60, 1 }
  0xfc   : > { %v793_v9 = vmin.f32 %v791_v60, %v792_v1 }
  0xfe   : > { %vm794_vm1 = vcmp.le.f32.partialorder %v2226_v33, %v793_v9  ;;  %vm795_vm2 = vcmp.le.f32.partialorder %v2224_v29, %v793_v9  ;;  %vm796_vm3 = vcmp.le.f32.partialorder %v2233_v43, %v793_v9  ;;  %vm797_vm4 = vcmp.le.f32.partialorder %v2230_v39, %v793_v9 }
  0xff   : > { %vm1759_vm5 = vcmp.ge.f32.partialorder %v793_v9, 1e+30  ;;  %v810_v14 = vsel %vm794_vm1, %v2236_v58, 128  ;;  %v811_v15 = vsel %vm795_vm2, %v2239_v61, 128  ;;  %v812_v16 = vsel %vm796_vm3, %v2242_v62, 128 }
 0x100   : > { %v813_v17 = vsel %vm797_vm4, %v2245_v63, 128  ;;  %v814_v18 = vsel %vm1759_vm5, %v2248_v0, 128  ;;  %v815_v19 = vsel %vm1759_vm5, %v2251_v2, 128  ;;  %v816_v20 = vsel %vm1759_vm5, %v2254_v3, 128 }
 0x101   : > { %v817_v21 = vsel %vm1759_vm5, %v2257_v4, 128  ;;  %v818_v22 = vsel %vm1759_vm5, %v2260_v5, 128  ;;  %v819_v23 = vsel %vm1759_vm5, %v2263_v6, 128  ;;  %v820_v24 = vsel %vm1759_vm5, %v2266_v7, 128 }
 0x102   : > { %v821_v25 = vsel %vm1759_vm5, %v2269_v8, 128  ;;  %v822_v26 = vsel %vm1759_vm5, %v2272_v10, 128  ;;  %v823_v27 = vsel %vm1759_vm5, %v2275_v11, 128  ;;  %v824_v28 = vsel %vm1759_vm5, %v2278_v12, 128 }
 0x103   : > { %v825_v30 = vsel %vm1759_vm5, %v2281_v13, 128  ;;  %vm826_vm6 = vcmp.lt.s32.totalorder %v810_v14, %v814_v18  ;;  %vm828_vm7 = vcmp.lt.s32.totalorder %v811_v15, %v815_v19  ;;  %vm830_vm8 = vcmp.lt.s32.totalorder %v812_v16, %v816_v20 }
 0x104   : > { %v827_v31 = vsel %vm826_vm6, %v810_v14, %v814_v18  ;;  %v829_v32 = vsel %vm828_vm7, %v811_v15, %v815_v19  ;;  %v831_v34 = vsel %vm830_vm8, %v812_v16, %v816_v20  ;;  %vm832_vm9 = vcmp.lt.s32.totalorder %v813_v17, %v817_v21 }
 0x105   : > { %v833_v35 = vsel %vm832_vm9, %v813_v17, %v817_v21  ;;  %vm834_vm10 = vcmp.lt.s32.totalorder %v827_v31, %v818_v22  ;;  %vm836_vm11 = vcmp.lt.s32.totalorder %v829_v32, %v819_v23  ;;  %vm838_vm12 = vcmp.lt.s32.totalorder %v831_v34, %v820_v24 }
 0x106   : > { %v835_v36 = vsel %vm834_vm10, %v827_v31, %v818_v22  ;;  %v837_v37 = vsel %vm836_vm11, %v829_v32, %v819_v23  ;;  %v839_v38 = vsel %vm838_vm12, %v831_v34, %v820_v24  ;;  %vm840_vm13 = vcmp.lt.s32.totalorder %v833_v35, %v821_v25 }
 0x107   : > { %v841_v40 = vsel %vm840_vm13, %v833_v35, %v821_v25  ;;  %vm842_vm14 = vcmp.lt.s32.totalorder %v835_v36, %v822_v26  ;;  %vm844_vm15 = vcmp.lt.s32.totalorder %v837_v37, %v823_v27  ;;  %vm846_vm1 = vcmp.lt.s32.totalorder %v839_v38, %v824_v28 }
 0x108   : > { %v843_v41 = vsel %vm842_vm14, %v835_v36, %v822_v26  ;;  %v845_v42 = vsel %vm844_vm15, %v837_v37, %v823_v27  ;;  %v847_v44 = vsel %vm846_vm1, %v839_v38, %v824_v28  ;;  %vm848_vm2 = vcmp.lt.s32.totalorder %v841_v40, %v825_v30 }
 0x109   : > { %v849_v45 = vsel %vm848_vm2, %v841_v40, %v825_v30  ;;  %vm850_vm3 = vcmp.lt.s32.totalorder %v843_v41, %v845_v42  ;;  %v865_v46 = vmax.f32 %v793_v9, 0.0  ;;  %v398_v40 = vld [vmem:[%s2205_s24 + $0x20] sm:$0xff] }
 0x10a   : > { %v851_v47 = vsel %vm850_vm3, %v843_v41, %v845_v42  ;;  %vm852_vm4 = vcmp.lt.s32.totalorder %v847_v44, %v849_v45  ;;  %1865 = vmatprep.mubr.msk.f32.mxu0 %vm427_vm0, %v398_v40  ;;  %v399_v41 = vld [vmem:[%s2205_s24 + $0x28] sm:$0xff]  ;;  %v404_v40 = vld [vmem:[%s2205_s24 + $0x50] sm:$0xff] }
 0x10b   : > { %v853_v48 = vsel %vm852_vm4, %v847_v44, %v849_v45  ;;  %2000 = vrsqrt.f32 %v865_v46  ;;  %vm868_vm9 = vcmp.eq.f32.partialorder %v865_v46, inf  ;;  %vm870_vm10 = vcmp.eq.f32.partialorder %v865_v46, 0.0  ;;  %1866 = vmatmul.mubr.msk.f32.gmra.mxu0 %vm427_vm0, %v399_v41 }
 0x10c   : > { %vm854_vm5 = vcmp.lt.s32.totalorder %v851_v47, %v853_v48  ;;  %v871_v59 = vand.u32 2147483648, %v865_v46 }
 0x10d   : > { %v855_v49 = vsel %vm854_vm5, %v851_v47, %v853_v48 }
 0x10e   : > { %v856_v50 = vrot.slane %v855_v49, 4 }
 0x110   : > { %vm857_vm6 = vcmp.lt.s32.totalorder %v855_v49, %v856_v50 }
 0x111   : > { %v858_v51 = vsel %vm857_vm6, %v855_v49, %v856_v50 }
 0x112   : > { %v859_v52 = vrot.slane %v858_v51, 2 }
 0x114   : > { %vm860_vm7 = vcmp.lt.s32.totalorder %v858_v51, %v859_v52 }
 0x115   : > { %v861_v53 = vsel %vm860_vm7, %v858_v51, %v859_v52 }
 0x116   : > { %v862_v54 = vrot.slane %v861_v53, 1 }
 0x118   : > { %v2001_v55 = vpop.eup %2000  ;;  %vm863_vm8 = vcmp.lt.s32.totalorder %v861_v53, %v862_v54 }
 0x119   : > { %v2315_v56 = vsel %vm863_vm8, %v861_v53, %v862_v54  ;;  %v867_v57 = vmul.f32 %v2001_v55, %v865_v46 }
 0x11a   : > { %vm2921_vm11 = vcmp.eq.s32.totalorder %v2236_v58, %v2315_v56  ;;  %vm877_vm12 = vcmp.eq.s32.totalorder %v2239_v61, %v2315_v56  ;;  %vm878_vm13 = vcmp.eq.s32.totalorder %v2242_v62, %v2315_v56  ;;  %vm879_vm14 = vcmp.eq.s32.totalorder %v2245_v63, %v2315_v56 }
 0x11b   : > { %v869_v60 = vsel %vm868_vm9, %v865_v46, %v867_v57  ;;  %v2329_v1 = vsel %vm2921_vm11, 1e+30, %v2226_v33  ;;  %v2335_v9 = vsel %vm877_vm12, 1e+30, %v2224_v29  ;;  %v2341_v14 = vsel %vm878_vm13, 1e+30, %v2233_v43 }
 0x11c   : > { %v872_v15 = vsel %vm870_vm10, %v871_v59, %v869_v60  ;;  %v2347_v16 = vsel %vm879_vm14, 1e+30, %v2230_v39  ;;  %v941_v33 = vmin.f32 %v2329_v1, 1e+30  ;;  %v942_v17 = vmin.f32 %v2335_v9, 1e+30 }
 0x11d   : > { %v873_v18 = vadd.f32 1e-08, %v872_v15  ;;  %v943_v29 = vmin.f32 %v2341_v14, 1e+30  ;;  %v944_v19 = vmin.f32 %v2347_v16, 1e+30  ;;  %vm891_vm15 = vcmp.eq.s32.totalorder %v2281_v13, %v2315_v56 }
 0x11e   : > { %v945_v20 = vmin.f32 %v941_v33, 1e+30  ;;  %v946_v21 = vmin.f32 %v942_v17, 1e+30  ;;  %vm890_vm1 = vcmp.eq.s32.totalorder %v2278_v12, %v2315_v56  ;;  %vm889_vm2 = vcmp.eq.s32.totalorder %v2275_v11, %v2315_v56  ;;  %v400_v57 = vld [vmem:[%s2205_s24 + $0x30] sm:$0xff]  ;;  %v401_v15 = vld [vmem:[%s2205_s24 + $0x38] sm:$0xff] }
 0x11f   : > { %2002 = vrcp.f32 %v873_v18  ;;  %v947_v43 = vmin.f32 %v943_v29, 1e+30  ;;  %v948_v22 = vmin.f32 %v944_v19, 1e+30  ;;  %vm888_vm3 = vcmp.eq.s32.totalorder %v2272_v10, %v2315_v56  ;;  %1868 = vmatprep.mubr.msk.f32.mxu0 %vm427_vm0, %v400_v57 }
 0x120   : > { %v949_v23 = vmin.f32 %v945_v20, 1e+30  ;;  %v950_v24 = vmin.f32 %v946_v21, 1e+30  ;;  %vm887_vm4 = vcmp.eq.s32.totalorder %v2269_v8, %v2315_v56  ;;  %vm886_vm5 = vcmp.eq.s32.totalorder %v2266_v7, %v2315_v56  ;;  %1869 = vmatmul.mubr.msk.f32.gmra.mxu0 %vm427_vm0, %v401_v15  ;;  %v402_v21 = vld [vmem:[%s2205_s24 + $0x40] sm:$0xff] }
 0x121   : > { %v951_v25 = vmin.f32 %v947_v43, 1e+30  ;;  %v952_v26 = vmin.f32 %v948_v22, 1e+30  ;;  %vm885_vm6 = vcmp.eq.s32.totalorder %v2263_v6, %v2315_v56  ;;  %vm884_vm7 = vcmp.eq.s32.totalorder %v2260_v5, %v2315_v56  ;;  %1871 = vmatprep.mubr.msk.f32.mxu0 %vm427_vm0, %v402_v21 }
 0x122   : > { %v953_v39 = vmin.f32 %v949_v23, %v950_v24  ;;  %vm883_vm8 = vcmp.eq.s32.totalorder %v2257_v4, %v2315_v56  ;;  %vm882_vm9 = vcmp.eq.s32.totalorder %v2254_v3, %v2315_v56  ;;  %vm881_vm10 = vcmp.eq.s32.totalorder %v2251_v2, %v2315_v56 }
 0x123   : > { %v954_v27 = vmin.f32 %v951_v25, %v952_v26  ;;  %vm880_vm11 = vcmp.eq.s32.totalorder %v2248_v0, %v2315_v56  ;;  %v403_v25 = vld [vmem:[%s2205_s24 + $0x48] sm:$0xff] }
 0x124   : > { %1872 = vmatmul.mubr.msk.f32.gmra.mxu0 %vm427_vm0, %v403_v25 }
 0x125   : > { %v955_v28 = vmin.f32 %v953_v39, %v954_v27  ;;  %1874 = vmatprep.mubr.msk.f32.mxu0 %vm427_vm0, %v404_v40 }
 0x127   : > { %v956_v30 = vrot.slane %v955_v28, 4 }
 0x129   : > { %v957_v31 = vmin.f32 %v955_v28, %v956_v30 }
 0x12b   : > { %v958_v32 = vrot.slane %v957_v31, 2 }
 0x12c   : > { %v2369_v34 = vpop.eup %2002 }
 0x12d   : > { %v959_v35 = vmin.f32 %v957_v31, %v958_v32  ;;  %v2380_v36 = vsel %vm891_vm15, %v2369_v34, 0.0  ;;  %v2383_v37 = vsel %vm890_vm1, %v2369_v34, 0.0  ;;  %v2386_v38 = vsel %vm889_vm2, %v2369_v34, 0.0 }
 0x12e   : > { %v2395_v42 = vsel %vm888_vm3, %v2369_v34, 0.0  ;;  %v2401_v44 = vsel %vm887_vm4, %v2369_v34, 0.0  ;;  %v2407_v45 = vsel %vm886_vm5, %v2369_v34, 0.0  ;;  %v2413_v46 = vsel %vm885_vm6, %v2369_v34, 0.0 }
 0x12f   : > { %v960_v47 = vrot.slane %v959_v35, 1  ;;  %v2420_v48 = vsel %vm884_vm7, %v2369_v34, 0.0  ;;  %v2426_v49 = vsel %vm883_vm8, %v2369_v34, 0.0  ;;  %v2432_v50 = vsel %vm882_vm9, %v2369_v34, 0.0 }
 0x130   : > { %v2438_v51 = vsel %vm881_vm10, %v2369_v34, 0.0  ;;  %v2444_v52 = vsel %vm880_vm11, %v2369_v34, 0.0  ;;  %v2450_v53 = vsel %vm879_vm14, %v2369_v34, 0.0  ;;  %v2456_v54 = vsel %vm878_vm13, %v2369_v34, 0.0 }
 0x131   : > { %v961_v55 = vmin.f32 %v959_v35, %v960_v47  ;;  %v2463_v59 = vsel %vm877_vm12, %v2369_v34, 0.0  ;;  %vm2924_vm11 = vcmp.eq.s32.totalorder %v2236_v58, %v2315_v56  ;;  %v405_v47 = vld [vmem:[%s2205_s24 + $0x58] sm:$0xff] }
 0x132   : > { %v2469_v60 = vsel %vm2924_vm11, %v2369_v34, 0.0  ;;  %1875 = vmatmul.mubr.msk.f32.gmra.mxu0 %vm427_vm0, %v405_v47 }
 0x133   : > { %vm962_vm13 = vcmp.le.f32.partialorder %v2329_v1, %v961_v55  ;;  %vm963_vm14 = vcmp.le.f32.partialorder %v2335_v9, %v961_v55  ;;  %vm964_vm15 = vcmp.le.f32.partialorder %v2341_v14, %v961_v55  ;;  %vm965_vm1 = vcmp.le.f32.partialorder %v2347_v16, %v961_v55 }
 0x134   : > { %vm1771_vm12 = vcmp.ge.f32.partialorder %v961_v55, 1e+30  ;;  %v978_v56 = vsel %vm962_vm13, %v2236_v58, 128  ;;  %v979_v33 = vsel %vm963_vm14, %v2239_v61, 128  ;;  %v980_v17 = vsel %vm964_vm15, %v2242_v62, 128 }
 0x135   : > { %v981_v18 = vsel %vm965_vm1, %v2245_v63, 128  ;;  %v982_v29 = vsel %vm1771_vm12, %v2248_v0, 128  ;;  %v983_v19 = vsel %vm1771_vm12, %v2251_v2, 128  ;;  %v984_v20 = vsel %vm1771_vm12, %v2254_v3, 128 }
 0x136   : > { %v985_v43 = vsel %vm1771_vm12, %v2257_v4, 128  ;;  %v986_v22 = vsel %vm1771_vm12, %v2260_v5, 128  ;;  %v987_v23 = vsel %vm1771_vm12, %v2263_v6, 128  ;;  %v988_v24 = vsel %vm1771_vm12, %v2266_v7, 128 }
 0x137   : > { %v989_v26 = vsel %vm1771_vm12, %v2269_v8, 128  ;;  %v990_v39 = vsel %vm1771_vm12, %v2272_v10, 128  ;;  %v991_v27 = vsel %vm1771_vm12, %v2275_v11, 128  ;;  %v992_v28 = vsel %vm1771_vm12, %v2278_v12, 128 }
 0x138   : > { %v993_v30 = vsel %vm1771_vm12, %v2281_v13, 128  ;;  %vm994_vm2 = vcmp.lt.s32.totalorder %v978_v56, %v982_v29  ;;  %vm996_vm3 = vcmp.lt.s32.totalorder %v979_v33, %v983_v19  ;;  %vm998_vm4 = vcmp.lt.s32.totalorder %v980_v17, %v984_v20 }
 0x139   : > { %v995_v31 = vsel %vm994_vm2, %v978_v56, %v982_v29  ;;  %v997_v32 = vsel %vm996_vm3, %v979_v33, %v983_v19  ;;  %v999_v35 = vsel %vm998_vm4, %v980_v17, %v984_v20  ;;  %vm1000_vm5 = vcmp.lt.s32.totalorder %v981_v18, %v985_v43  ;;  %v406_v29 = vld [vmem:[%s2205_s24 + $0x60] sm:$0xff] }
 0x13a   : > { %v1001_v41 = vsel %vm1000_vm5, %v981_v18, %v985_v43  ;;  %vm1002_vm6 = vcmp.lt.s32.totalorder %v995_v31, %v986_v22  ;;  %vm1004_vm7 = vcmp.lt.s32.totalorder %v997_v32, %v987_v23  ;;  %vm1006_vm8 = vcmp.lt.s32.totalorder %v999_v35, %v988_v24  ;;  %1877 = vmatprep.mubr.msk.f32.mxu0 %vm427_vm0, %v406_v29  ;;  %v407_v43 = vld [vmem:[%s2205_s24 + $0x68] sm:$0xff] }
 0x13b   : > { %v1003_v57 = vsel %vm1002_vm6, %v995_v31, %v986_v22  ;;  %v1005_v15 = vsel %vm1004_vm7, %v997_v32, %v987_v23  ;;  %v1007_v21 = vsel %vm1006_vm8, %v999_v35, %v988_v24  ;;  %vm1008_vm9 = vcmp.lt.s32.totalorder %v1001_v41, %v989_v26  ;;  %1878 = vmatmul.mubr.msk.f32.gmra.mxu0 %vm427_vm0, %v407_v43  ;;  %v408_v24 = vld [vmem:[%s2205_s24 + $0x70] sm:$0xff]  ;;  %v1286_v35 = vld [vmem:[%s2916_s4 + $0x18] sm:$0xff]  ;;  %v1471_v29 = vld [vmem:[%s2917_s5 + $0x8] sm:$0xff] }
 0x13c   : > { %v1009_v56 = vsel %vm1008_vm9, %v1001_v41, %v989_v26  ;;  %vm1010_vm10 = vcmp.lt.s32.totalorder %v1003_v57, %v990_v39  ;;  %vm1012_vm11 = vcmp.lt.s32.totalorder %v1005_v15, %v991_v27  ;;  %vm1014_vm13 = vcmp.lt.s32.totalorder %v1007_v21, %v992_v28  ;;  %1880 = vmatprep.mubr.msk.f32.mxu0 %vm427_vm0, %v408_v24  ;;  %v409_v26 = vld [vmem:[%s2205_s24 + $0x78] sm:$0xff]  ;;  %v1285_v32 = vld [vmem:[%s2916_s4 + $0x10] sm:$0xff]  ;;  %v1279_v41 = vld [vmem:[%s2539_s11] sm:$0xff] }
 0x13d   : > { %v1011_v33 = vsel %vm1010_vm10, %v1003_v57, %v990_v39  ;;  %v1013_v17 = vsel %vm1012_vm11, %v1005_v15, %v991_v27  ;;  %v1015_v18 = vsel %vm1014_vm13, %v1007_v21, %v992_v28  ;;  %vm1016_vm14 = vcmp.lt.s32.totalorder %v1009_v56, %v993_v30  ;;  %v1283_v27 = vld [vmem:[%s2916_s4] sm:$0xff]  ;;  %v1472_v15 = vld [vmem:[%s2917_s5 + $0x10] sm:$0xff] }
 0x13e   : > { %v1017_v19 = vsel %vm1016_vm14, %v1009_v56, %v993_v30  ;;  %vm1018_vm15 = vcmp.lt.s32.totalorder %v1011_v33, %v1013_v17  ;;  %v1033_v20 = vmax.f32 %v961_v55, 0.0  ;;  %v1287_v55 = vld [vmem:[%s388_s16] sm:$0xff]  ;;  %1885 = vmatprep.mubr.msk.f32.mxu1 %vm427_vm0, %v1283_v27  ;;  %v1284_v30 = vld [vmem:[%s2916_s4 + $0x8] sm:$0xff] }
 0x13f   : > { %v1019_v22 = vsel %vm1018_vm15, %v1011_v33, %v1013_v17  ;;  %vm1020_vm1 = vcmp.lt.s32.totalorder %v1015_v18, %v1017_v19  ;;  %1881 = vmatmul.mubr.msk.f32.gmra.mxu0 %vm427_vm0, %v409_v26  ;;  %1883 = vmatprep.subr.mxu1 %v1287_v55  ;;  %v2092_v17 = vmov 0  }
 0x140   : > { %v1021_v23 = vsel %vm1020_vm1, %v1015_v18, %v1017_v19  ;;  %2004 = vrsqrt.f32 %v1033_v20  ;;  %1884 = vmatpush3.msra.mxu1 %v1287_v55  ;;  %1923 = vmatprep.mubr.f32.mxu0 %v1279_v41  ;;  %vm1036_vm5 = vcmp.eq.f32.partialorder %v1033_v20, inf  ;;  %vm1038_vm6 = vcmp.eq.f32.partialorder %v1033_v20, 0.0  ;;  %v1473_v18 = vld [vmem:[%s2917_s5 + $0x18] sm:$0xff] }
 0x141   : > { %vm1022_vm12 = vcmp.lt.s32.totalorder %v1019_v22, %v1021_v23  ;;  %1886 = vmatmul.mubr.msk.f32.vlgmr.msra.gmra.mxu1 %vm427_vm0, %v1284_v30  ;;  %v1039_v33 = vand.u32 2147483648, %v1033_v20  ;;  %1999 = vset.pattern.permute.xlu1 %v2092_v17 }
 0x142   : > { %v1023_v25 = vsel %vm1022_vm12, %v1019_v22, %v1021_v23  ;;  %1888 = vmatprep.mubr.msk.f32.mxu1 %vm427_vm0, %v1285_v32  ;;  %1998 = vset.pattern.permute.xlu0 %v2092_v17 }
 0x143   : > { %v1024_v39 = vrot.slane %v1023_v25, 4  ;;  %1486 = vperm.xlu1 %1999, %v1472_v15   ;;  %1491 = vperm.xlu0 %1998, %v1473_v18  }
 0x145   : > { %vm1025_vm2 = vcmp.lt.s32.totalorder %v1023_v25, %v1024_v39  ;;  %1889 = vmatmul.mubr.msk.f32.gmra.mxu1 %vm427_vm0, %v1286_v35 }
 0x146   : > { %v1026_v28 = vsel %vm1025_vm2, %v1023_v25, %v1024_v39 }
 0x147   : > { %v1027_v31 = vrot.slane %v1026_v28, 2  ;;  %1481 = vperm.xlu1 %1999, %v1471_v29  }
 0x149   : > { %vm1028_vm3 = vcmp.lt.s32.totalorder %v1026_v28, %v1027_v31 }
 0x14a   : > { %v1029_v40 = vsel %vm1028_vm3, %v1026_v28, %v1027_v31 }
 0x14b   : > { %v1030_v47 = vrot.slane %v1029_v40, 1 }
 0x14d   : > { %v2005_v57 = vpop.eup %2004  ;;  %vm1031_vm4 = vcmp.lt.s32.totalorder %v1029_v40, %v1030_v47 }
 0x14e   : > { %v2553_v21 = vsel %vm1031_vm4, %v1029_v40, %v1030_v47  ;;  %v1035_v56 = vmul.f32 %v2005_v57, %v1033_v20  ;;  %v1504_v47 = vld [vmem:[%s2919_s7] sm:$0xff] }
 0x14f   : > { %vm1044_vm0 = vcmp.eq.s32.totalorder %v2236_v58, %v2553_v21  ;;  %vm1045_vm7 = vcmp.eq.s32.totalorder %v2239_v61, %v2553_v21  ;;  %vm1046_vm8 = vcmp.eq.s32.totalorder %v2242_v62, %v2553_v21  ;;  %vm1047_vm9 = vcmp.eq.s32.totalorder %v2245_v63, %v2553_v21 }
 0x150   : > { %v1037_v19 = vsel %vm1036_vm5, %v1033_v20, %v1035_v56  ;;  %v2574_v43 = vsel %vm1044_vm0, 1e+30, %v2329_v1  ;;  %v2580_v22 = vsel %vm1045_vm7, 1e+30, %v2335_v9  ;;  %v2586_v23 = vsel %vm1046_vm8, 1e+30, %v2341_v14 }
 0x151   : > { %v1040_v24 = vsel %vm1038_vm6, %v1039_v33, %v1037_v19  ;;  %v2593_v1 = vsel %vm1047_vm9, 1e+30, %v2347_v16  ;;  %v1109_v25 = vmin.f32 %v2574_v43, 1e+30  ;;  %v1110_v9 = vmin.f32 %v2580_v22, 1e+30 }
 0x152   : > { %v1041_v26 = vadd.f32 1e-08, %v1040_v24  ;;  %v1111_v39 = vmin.f32 %v2586_v23, 1e+30  ;;  %v1112_v55 = vmin.f32 %v2593_v1, 1e+30  ;;  %vm1059_vm10 = vcmp.eq.s32.totalorder %v2281_v13, %v2553_v21 }
 0x153   : > { %v1113_v14 = vmin.f32 %v1109_v25, 1e+30  ;;  %v1114_v27 = vmin.f32 %v1110_v9, 1e+30  ;;  %v1470_v16 = vld [vmem:[%s2917_s5] sm:$0xff]  ;;  %v1505_v56 = vld [vmem:[%s2919_s7 + $0x8] sm:$0xff]  ;;  %vm1058_vm11 = vcmp.eq.s32.totalorder %v2278_v12, %v2553_v21  ;;  %vm1057_vm13 = vcmp.eq.s32.totalorder %v2275_v11, %v2553_v21 }
 0x154   : > { %2006 = vrcp.f32 %v1041_v26  ;;  %v1115_v20 = vmin.f32 %v1111_v39, 1e+30  ;;  %v1116_v28 = vmin.f32 %v1112_v55, 1e+30  ;;  %1476 = vperm.xlu1 %1999, %v1470_v16   ;;  %vm1056_vm14 = vcmp.eq.s32.totalorder %v2272_v10, %v2553_v21 }
 0x155   : > { %v1117_v30 = vmin.f32 %v1113_v14, 1e+30  ;;  %v1118_v31 = vmin.f32 %v1114_v27, 1e+30  ;;  %vm1055_vm15 = vcmp.eq.s32.totalorder %v2269_v8, %v2553_v21  ;;  %vm1054_vm1 = vcmp.eq.s32.totalorder %v2266_v7, %v2553_v21 }
 0x156   : > { %v1119_v32 = vmin.f32 %v1115_v20, 1e+30  ;;  %v1120_v35 = vmin.f32 %v1116_v28, 1e+30  ;;  %vm1053_vm12 = vcmp.eq.s32.totalorder %v2263_v6, %v2553_v21  ;;  %vm1052_vm2 = vcmp.eq.s32.totalorder %v2260_v5, %v2553_v21 }
 0x157   : > { %v1121_v40 = vmin.f32 %v1117_v30, %v1118_v31  ;;  %vm1051_vm3 = vcmp.eq.s32.totalorder %v2257_v4, %v2553_v21  ;;  %vm1050_vm4 = vcmp.eq.s32.totalorder %v2254_v3, %v2553_v21  ;;  %vm1049_vm5 = vcmp.eq.s32.totalorder %v2251_v2, %v2553_v21 }
 0x158   : > { %v1122_v41 = vmin.f32 %v1119_v32, %v1120_v35  ;;  %1508 = vperm.xlu1 %1999, %v1504_v47   ;;  %vm1048_vm6 = vcmp.eq.s32.totalorder %v2248_v0, %v2553_v21 }
 0x15a   : > { %v1123_v57 = vmin.f32 %v1121_v40, %v1122_v41 }
 0x15c   : > { %v1124_v15 = vrot.slane %v1123_v57, 4  ;;  %1513 = vperm.xlu1 %1999, %v1505_v56  }
 0x15e   : > { %v1125_v33 = vmin.f32 %v1123_v57, %v1124_v15 }
 0x160   : > { %v1126_v17 = vrot.slane %v1125_v33, 2 }
 0x161   : > { %v2624_v18 = vpop.eup %2006 }
 0x162   : > { %v1127_v29 = vmin.f32 %v1125_v33, %v1126_v17  ;;  %v1075_v19 = vsel %vm1059_vm10, %v2624_v18, 0.0  ;;  %v2640_v24 = vadd.f32 %v2624_v18, %v2369_v34  ;;  %v1074_v25 = vsel %vm1058_vm11, %v2624_v18, 0.0 }
 0x163   : > { %v2647_v9 = vadd.f32 %v1075_v19, %v2380_v36  ;;  %v2650_v26 = vadd.f32 %v1074_v25, %v2383_v37  ;;  %v1073_v39 = vsel %vm1057_vm13, %v2624_v18, 0.0  ;;  %v1072_v34 = vsel %vm1056_vm14, %v2624_v18, 0.0 }
 0x164   : > { %v1128_v55 = vrot.slane %v1127_v29, 1  ;;  %v2661_v14 = vadd.f32 %v1073_v39, %v2386_v38  ;;  %v2664_v36 = vadd.f32 %v1072_v34, %v2395_v42  ;;  %v1071_v37 = vsel %vm1055_vm15, %v2624_v18, 0.0 }
 0x165   : > { %v2671_v27 = vadd.f32 %v1071_v37, %v2401_v44  ;;  %v1070_v20 = vsel %vm1054_vm1, %v2624_v18, 0.0  ;;  %v1069_v38 = vsel %vm1053_vm12, %v2624_v18, 0.0  ;;  %v1068_v42 = vsel %vm1052_vm2, %v2624_v18, 0.0 }
 0x166   : > { %v1129_v28 = vmin.f32 %v1127_v29, %v1128_v55  ;;  %v2686_v16 = vadd.f32 %v1070_v20, %v2407_v45  ;;  %v2689_v44 = vadd.f32 %v1069_v38, %v2413_v46  ;;  %v2692_v30 = vadd.f32 %v1068_v42, %v2420_v48 }
 0x167   : > { %v1067_v31 = vsel %vm1051_vm3, %v2624_v18, 0.0  ;;  %v1066_v32 = vsel %vm1050_vm4, %v2624_v18, 0.0  ;;  %v1065_v45 = vsel %vm1049_vm5, %v2624_v18, 0.0  ;;  %v1064_v46 = vsel %vm1048_vm6, %v2624_v18, 0.0 }
 0x168   : > { %2925 = vst [vmem:[#allocation5_spill] sm:$0xff] %v2686_v16  ;;  %2926 = vst [vmem:[#allocation6_spill] sm:$0xff] %v2689_v44  ;;  %vm1130_vm10 = vcmp.le.f32.partialorder %v2574_v43, %v1129_v28  ;;  %vm1131_vm11 = vcmp.le.f32.partialorder %v2580_v22, %v1129_v28  ;;  %vm1132_vm13 = vcmp.le.f32.partialorder %v2586_v23, %v1129_v28  ;;  %vm1783_vm15 = vcmp.ge.f32.partialorder %v1129_v28, 1e+30 }
 0x169   : > { %2927 = vst [vmem:[#allocation7_spill] sm:$0xff] %v2692_v30  ;;  %vm1133_vm14 = vcmp.le.f32.partialorder %v2593_v1, %v1129_v28  ;;  %v1146_v48 = vsel %vm1130_vm10, %v2236_v58, 128  ;;  %v1147_v35 = vsel %vm1131_vm11, %v2239_v61, 128  ;;  %v1148_v40 = vsel %vm1132_vm13, %v2242_v62, 128 }
 0x16a   : > { %v1149_v41 = vsel %vm1133_vm14, %v2245_v63, 128  ;;  %v1150_v47 = vsel %vm1783_vm15, %v2248_v0, 128  ;;  %v1151_v43 = vsel %vm1783_vm15, %v2251_v2, 128  ;;  %v1152_v22 = vsel %vm1783_vm15, %v2254_v3, 128 }
 0x16b   : > { %v1153_v23 = vsel %vm1783_vm15, %v2257_v4, 128  ;;  %v1154_v1 = vsel %vm1783_vm15, %v2260_v5, 128  ;;  %v1155_v57 = vsel %vm1783_vm15, %v2263_v6, 128  ;;  %v1156_v15 = vsel %vm1783_vm15, %v2266_v7, 128 }
 0x16c   : > { %v1157_v56 = vsel %vm1783_vm15, %v2269_v8, 128  ;;  %v1158_v33 = vsel %vm1783_vm15, %v2272_v10, 128  ;;  %v1159_v17 = vsel %vm1783_vm15, %v2275_v11, 128  ;;  %v1160_v29 = vsel %vm1783_vm15, %v2278_v12, 128 }
 0x16d   : > { %v1161_v19 = vsel %vm1783_vm15, %v2281_v13, 128  ;;  %vm1162_vm1 = vcmp.lt.s32.totalorder %v1146_v48, %v1150_v47  ;;  %vm1164_vm12 = vcmp.lt.s32.totalorder %v1147_v35, %v1151_v43  ;;  %vm1166_vm2 = vcmp.lt.s32.totalorder %v1148_v40, %v1152_v22 }
 0x16e   : > { %v1163_v25 = vsel %vm1162_vm1, %v1146_v48, %v1150_v47  ;;  %v1165_v39 = vsel %vm1164_vm12, %v1147_v35, %v1151_v43  ;;  %v1167_v34 = vsel %vm1166_vm2, %v1148_v40, %v1152_v22  ;;  %vm1168_vm3 = vcmp.lt.s32.totalorder %v1149_v41, %v1153_v23 }
 0x16f   : > { %v1169_v55 = vsel %vm1168_vm3, %v1149_v41, %v1153_v23  ;;  %vm1170_vm4 = vcmp.lt.s32.totalorder %v1163_v25, %v1154_v1  ;;  %vm1172_vm5 = vcmp.lt.s32.totalorder %v1165_v39, %v1155_v57  ;;  %vm1174_vm6 = vcmp.lt.s32.totalorder %v1167_v34, %v1156_v15 }
 0x170   : > { %v1171_v37 = vsel %vm1170_vm4, %v1163_v25, %v1154_v1  ;;  %v1173_v20 = vsel %vm1172_vm5, %v1165_v39, %v1155_v57  ;;  %v1175_v38 = vsel %vm1174_vm6, %v1167_v34, %v1156_v15  ;;  %vm1176_vm10 = vcmp.lt.s32.totalorder %v1169_v55, %v1157_v56 }
 0x171   : > { %v1177_v42 = vsel %vm1176_vm10, %v1169_v55, %v1157_v56  ;;  %vm1178_vm11 = vcmp.lt.s32.totalorder %v1171_v37, %v1158_v33  ;;  %vm1180_vm13 = vcmp.lt.s32.totalorder %v1173_v20, %v1159_v17  ;;  %vm1182_vm14 = vcmp.lt.s32.totalorder %v1175_v38, %v1160_v29 }
 0x172   : > { %v1179_v30 = vsel %vm1178_vm11, %v1171_v37, %v1158_v33  ;;  %v1181_v44 = vsel %vm1180_vm13, %v1173_v20, %v1159_v17  ;;  %v1183_v16 = vsel %vm1182_vm14, %v1175_v38, %v1160_v29  ;;  %vm1184_vm15 = vcmp.lt.s32.totalorder %v1177_v42, %v1161_v19  ;;  %v2928_v37 = vld [vmem:[#allocation5_spill] sm:$0xff]  ;;  %v2930_v38 = vld [vmem:[#allocation7_spill] sm:$0xff] }
 0x173   : > { %v1185_v48 = vsel %vm1184_vm15, %v1177_v42, %v1161_v19  ;;  %vm1186_vm1 = vcmp.lt.s32.totalorder %v1179_v30, %v1181_v44  ;;  %v1201_v35 = vmax.f32 %v1129_v28, 0.0  ;;  %v2743_v40 = vadd.f32 %v1067_v31, %v2426_v49 }
 0x174   : > { %v1187_v41 = vsel %vm1186_vm1, %v1179_v30, %v1181_v44  ;;  %vm1188_vm12 = vcmp.lt.s32.totalorder %v1183_v16, %v1185_v48  ;;  %v2746_v47 = vadd.f32 %v1066_v32, %v2432_v50  ;;  %v2749_v43 = vadd.f32 %v1065_v45, %v2438_v51 }
 0x175   : > { %v1189_v22 = vsel %vm1188_vm12, %v1183_v16, %v1185_v48  ;;  %2008 = vrsqrt.f32 %v1201_v35  ;;  %v2752_v23 = vadd.f32 %v1064_v46, %v2444_v52  ;;  %v1063_v49 = vsel %vm1047_vm9, %v2624_v18, 0.0 }
 0x176   : > { %vm1190_vm2 = vcmp.lt.s32.totalorder %v1187_v41, %v1189_v22  ;;  %v2759_v44 = vadd.f32 %v1063_v49, %v2450_v53  ;;  %v1062_v50 = vsel %vm1046_vm8, %v2624_v18, 0.0  ;;  %v1061_v51 = vsel %vm1045_vm7, %v2624_v18, 0.0 }
 0x177   : > { %v1191_v28 = vsel %vm1190_vm2, %v1187_v41, %v1189_v22  ;;  %v2770_v16 = vadd.f32 %v1062_v50, %v2456_v54  ;;  %v2773_v30 = vadd.f32 %v1061_v51, %v2463_v59  ;;  %v1060_v53 = vsel %vm1044_vm0, %v2624_v18, 0.0 }
 0x178   : > { %v1192_v52 = vrot.slane %v1191_v28, 4  ;;  %v2780_v31 = vadd.f32 %v1060_v53, %v2469_v60  ;;  %vm1204_vm9 = vcmp.eq.f32.partialorder %v1201_v35, inf  ;;  %v1207_v54 = vand.u32 2147483648, %v1201_v35 }
 0x179   : > { %vm1206_vm3 = vcmp.eq.f32.partialorder %v1201_v35, 0.0 }
 0x17a   : > { %vm1193_vm8 = vcmp.lt.s32.totalorder %v1191_v28, %v1192_v52 }
 0x17b   : > { %v1194_v32 = vsel %vm1193_vm8, %v1191_v28, %v1192_v52 }
 0x17c   : > { %v1195_v45 = vrot.slane %v1194_v32, 2 }
 0x17e   : > { %vm1196_vm7 = vcmp.lt.s32.totalorder %v1194_v32, %v1195_v45 }
 0x17f   : > { %v1197_v59 = vsel %vm1196_vm7, %v1194_v32, %v1195_v45 }
 0x180   : > { %v1198_v33 = vrot.slane %v1197_v59, 1 }
 0x182   : > { %v2009_v46 = vpop.eup %2008  ;;  %vm1199_vm4 = vcmp.lt.s32.totalorder %v1197_v59, %v1198_v33 }
 0x183   : > { %v1203_v1 = vmul.f32 %v2009_v46, %v1201_v35  ;;  %v1200_v21 = vsel %vm1199_vm4, %v1197_v59, %v1198_v33  ;;  %v1281_v46 = vld [vmem:[%s2539_s11 + $0x10] sm:$0xff] }
 0x184   : > { %vm1227_vm0 = vcmp.eq.s32.totalorder %v2281_v13, %v1200_v21  ;;  %vm1226_vm5 = vcmp.eq.s32.totalorder %v2278_v12, %v1200_v21  ;;  %vm1225_vm6 = vcmp.eq.s32.totalorder %v2275_v11, %v1200_v21  ;;  %vm1224_vm10 = vcmp.eq.s32.totalorder %v2272_v10, %v1200_v21 }
 0x185   : > { %v1205_v57 = vsel %vm1204_vm9, %v1201_v35, %v1203_v1  ;;  %vm1223_vm11 = vcmp.eq.s32.totalorder %v2269_v8, %v1200_v21  ;;  %vm1222_vm13 = vcmp.eq.s32.totalorder %v2266_v7, %v1200_v21  ;;  %vm1221_vm14 = vcmp.eq.s32.totalorder %v2263_v6, %v1200_v21  ;;  %v1282_v1 = vld [vmem:[%s2539_s11 + $0x18] sm:$0xff] }
 0x186   : > { %v1208_v15 = vsel %vm1206_vm3, %v1207_v54, %v1205_v57  ;;  %vm1220_vm15 = vcmp.eq.s32.totalorder %v2260_v5, %v1200_v21  ;;  %vm1219_vm1 = vcmp.eq.s32.totalorder %v2257_v4, %v1200_v21  ;;  %vm1218_vm12 = vcmp.eq.s32.totalorder %v2254_v3, %v1200_v21 }
 0x187   : > { %v1209_v56 = vadd.f32 1e-08, %v1208_v15  ;;  %vm1217_vm2 = vcmp.eq.s32.totalorder %v2251_v2, %v1200_v21  ;;  %vm1216_vm8 = vcmp.eq.s32.totalorder %v2248_v0, %v1200_v21  ;;  %vm1215_vm7 = vcmp.eq.s32.totalorder %v2245_v63, %v1200_v21 }
 0x188   : > { %vm1214_vm9 = vcmp.eq.s32.totalorder %v2242_v62, %v1200_v21  ;;  %vm1213_vm3 = vcmp.eq.s32.totalorder %v2239_v61, %v1200_v21  ;;  %vm1212_vm4 = vcmp.eq.s32.totalorder %v2236_v58, %v1200_v21 }
 0x189   : > { %2010 = vrcp.f32 %v1209_v56 }
 0x196   : > { %v2011_v60 = vpop.eup %2010 }
 0x197   : > { %v1243_v18 = vsel %vm1227_vm0, %v2011_v60, 0.0  ;;  %v1260_v17 = vadd.f32 %v2011_v60, %v2640_v24  ;;  %v1242_v29 = vsel %vm1226_vm5, %v2011_v60, 0.0  ;;  %v1241_v19 = vsel %vm1225_vm6, %v2011_v60, 0.0 }
 0x198   : > { %v1259_v25 = vadd.f32 %v1243_v18, %v2647_v9  ;;  %v1258_v39 = vadd.f32 %v1242_v29, %v2650_v26  ;;  %v1257_v34 = vadd.f32 %v1241_v19, %v2661_v14  ;;  %v1240_v55 = vsel %vm1224_vm10, %v2011_v60, 0.0  ;;  %v2929_v14 = vld [vmem:[#allocation6_spill] sm:$0xff] }
 0x199   : > { %2012 = vrcp.f32 %v1260_v17  ;;  %v1256_v13 = vadd.f32 %v1240_v55, %v2664_v36  ;;  %v1239_v24 = vsel %vm1223_vm11, %v2011_v60, 0.0  ;;  %v1238_v12 = vsel %vm1222_vm13, %v2011_v60, 0.0 }
 0x19a   : > { %v1255_v11 = vadd.f32 %v1239_v24, %v2671_v27  ;;  %v1254_v9 = vadd.f32 %v1238_v12, %v2928_v37  ;;  %v1237_v26 = vsel %vm1221_vm14, %v2011_v60, 0.0  ;;  %v1236_v10 = vsel %vm1220_vm15, %v2011_v60, 0.0 }
 0x19b   : > { %v1253_v20 = vadd.f32 %v1237_v26, %v2929_v14  ;;  %v1252_v36 = vadd.f32 %v1236_v10, %v2930_v38  ;;  %v1235_v8 = vsel %vm1219_vm1, %v2011_v60, 0.0  ;;  %v1234_v7 = vsel %vm1218_vm12, %v2011_v60, 0.0 }
 0x19c   : > { %v1251_v27 = vadd.f32 %v1235_v8, %v2743_v40  ;;  %v1250_v42 = vadd.f32 %v1234_v7, %v2746_v47  ;;  %v1233_v6 = vsel %vm1217_vm2, %v2011_v60, 0.0  ;;  %v1232_v5 = vsel %vm1216_vm8, %v2011_v60, 0.0 }
 0x19d   : > { %v1249_v48 = vadd.f32 %v1233_v6, %v2749_v43  ;;  %v1248_v35 = vadd.f32 %v1232_v5, %v2752_v23  ;;  %v1231_v4 = vsel %vm1215_vm7, %v2011_v60, 0.0  ;;  %v1230_v3 = vsel %vm1214_vm9, %v2011_v60, 0.0 }
 0x19e   : > { %v1247_v40 = vadd.f32 %v1231_v4, %v2759_v44  ;;  %v1246_v41 = vadd.f32 %v1230_v3, %v2770_v16  ;;  %v1229_v2 = vsel %vm1213_vm3, %v2011_v60, 0.0  ;;  %v1228_v0 = vsel %vm1212_vm4, %v2011_v60, 0.0  ;;  %v1503_v3 = vld [vmem:[%s2918_s6 + $0x8] sm:$0xff] }
 0x19f   : > { %v1245_v47 = vadd.f32 %v1229_v2, %v2773_v30  ;;  %v1244_v43 = vadd.f32 %v1228_v0, %v2780_v31  ;;  %v1280_v31 = vld [vmem:[%s2539_s11 + $0x8] sm:$0xff]  ;;  %vm1516_vm0 = vcmask 261120   ;;  %s2018_s11 = sshll.u32 %s2093_s30, 4  ;;  %s2019_s11 = int_to_ptr.vmem [resolvable:$false] %s2018_s11 }
 0x1a0   : > { %s2020_s24 = scalar_lea.vmem %s2019_s11, 512  ;;  %p2021_p1 = scmp.lt.s32.totalorder %s2860_s12, %s2019_s11 }
 0x1a1   : > { %p2022_p2 = scmp.lt.s32.totalorder %s2020_s24, %s2014_s23 }
 0x1a3   : > { %p2023_p3 = por %p2022_p2, %p2021_p1 }
 0x1a5   : > { %p2024_p5 = pnand %p2023_p3, %p2017_p0 }
 0x1a6   : > { %v2013_v22 = vpop.eup %2012 }
 0x1a7   : > { %v1278_v63 = vmul.f32 %v2013_v22, %v1259_v25  ;;  %v1277_v23 = vmul.f32 %v2013_v22, %v1258_v39  ;;  %v1276_v49 = vmul.f32 %v2013_v22, %v1257_v34  ;;  %v1275_v62 = vmul.f32 %v2013_v22, %v1256_v13  ;;  %v1502_v25 = vld [vmem:[%s2918_s6] sm:$0xff] }
 0x1a8   : > { %v1274_v28 = vmul.f32 %v2013_v22, %v1255_v11  ;;  %v1273_v50 = vmul.f32 %v2013_v22, %v1254_v9  ;;  %v1272_v44 = vmul.f32 %v2013_v22, %v1253_v20  ;;  %v1271_v51 = vmul.f32 %v2013_v22, %v1252_v36  ;;  %1937 = vmatprep.mubr.msk.f32.mxu1 %vm1516_vm0, %v1502_v25 }
 0x1a9   : > { %1891 = vmatprep.subr.mxu0 %v1278_v63  ;;  %v1270_v52 = vmul.f32 %v2013_v22, %v1251_v27  ;;  %v1269_v61 = vmul.f32 %v2013_v22, %v1250_v42  ;;  %v1268_v16 = vmul.f32 %v2013_v22, %v1249_v48  ;;  %v1267_v53 = vmul.f32 %v2013_v22, %v1248_v35 }
 0x1aa   : > { %1892 = vmatpush3.msra.mxu0 %v1278_v63  ;;  %v1266_v58 = vmul.f32 %v2013_v22, %v1247_v40  ;;  %v1265_v32 = vmul.f32 %v2013_v22, %v1246_v41  ;;  %v1264_v30 = vmul.f32 %v2013_v22, %v1245_v47  ;;  %v1263_v45 = vmul.f32 %v2013_v22, %v1244_v43 }
 0x1ab   : > { %1893 = vmatprep.subr.mxu0 %v1277_v23 }
 0x1ac   : > { %1894 = vmatpush3.msra.mxu0 %v1277_v23 }
 0x1ad   : > { %1895 = vmatprep.subr.mxu0 %v1276_v49 }
 0x1ae   : > { %1896 = vmatpush3.msra.mxu0 %v1276_v49 }
 0x1af   : > { %1897 = vmatprep.subr.mxu0 %v1275_v62 }
 0x1b0   : > { %1898 = vmatpush3.msra.mxu0 %v1275_v62 }
 0x1b1   : > { %1899 = vmatprep.subr.mxu0 %v1274_v28 }
 0x1b2   : > { %1900 = vmatpush3.msra.mxu0 %v1274_v28 }
 0x1b3   : > { %1901 = vmatprep.subr.mxu0 %v1273_v50 }
 0x1b4   : > { %1902 = vmatpush3.msra.mxu0 %v1273_v50 }
 0x1b5   : > { %1903 = vmatprep.subr.mxu0 %v1272_v44 }
 0x1b6   : > { %1904 = vmatpush3.msra.mxu0 %v1272_v44 }
 0x1b7   : > { %1905 = vmatprep.subr.mxu0 %v1271_v51 }
 0x1b8   : > { %1906 = vmatpush3.msra.mxu0 %v1271_v51 }
 0x1b9   : > { %1907 = vmatprep.subr.mxu0 %v1270_v52 }
 0x1ba   : > { %1908 = vmatpush3.msra.mxu0 %v1270_v52 }
 0x1bb   : > { %1909 = vmatprep.subr.mxu0 %v1269_v61 }
 0x1bc   : > { %1910 = vmatpush3.msra.mxu0 %v1269_v61 }
 0x1bd   : > { %1911 = vmatprep.subr.mxu0 %v1268_v16 }
 0x1be   : > { %1912 = vmatpush3.msra.mxu0 %v1268_v16  ;;  %v1487_v34 = vpop.permute.xlu1 %1486  ;;  %v1492_v9 = vpop.permute.xlu0 %1491 }
 0x1bf   : > { %1913 = vmatprep.subr.mxu0 %v1267_v53 }
 0x1c0   : > { %1914 = vmatpush3.msra.mxu0 %v1267_v53 }
 0x1c1   : > { %1915 = vmatprep.subr.mxu0 %v1266_v58 }
 0x1c2   : > { %1916 = vmatpush3.msra.mxu0 %v1266_v58  ;;  %v1482_v11 = vpop.permute.xlu1 %1481 }
 0x1c3   : > { %1917 = vmatprep.subr.mxu0 %v1265_v32 }
 0x1c4   : > { %1918 = vmatpush3.msra.mxu0 %v1265_v32 }
 0x1c5   : > { %1919 = vmatprep.subr.mxu0 %v1264_v30 }
 0x1c6   : > { %1920 = vmatpush3.msra.mxu0 %v1264_v30 }
 0x1c7   : > { %1921 = vmatprep.subr.mxu0 %v1263_v45 }
 0x1c8   : > { %1922 = vmatpush3.msra.mxu0 %v1263_v45 }
 0x1c9   : > { %1924 = vmatmul.mubr.f32.vlgmr.msra.gmra.mxu0 %v1280_v31 }
 0x1ca   : > { %1926 = vmatprep.mubr.f32.mxu0 %v1281_v46 }
 0x1cb   : > { %v1867_v54 = vpop.f32.mrf.mxu0 }
 0x1cd   : > { %1927 = vmatmul.mubr.f32.gmra.mxu0 %v1282_v1  ;;  %v617_v57 = vpop.f32.mrf.mxu0 }
 0x1cf   : > { %v1477_v6 = vpop.permute.xlu1 %1476 }
 0x1d3   : > { %v1509_v40 = vpop.permute.xlu1 %1508 }
 0x1d7   : > { %v1514_v41 = vpop.permute.xlu1 %1513 }
 0x1e0   : > { %v1870_v59 = vpop.f32.mrf.mxu0 }
 0x1e2   : > { %v627_v15 = vpop.f32.mrf.mxu0 }
 0x1e4   : > { %v1873_v56 = vpop.f32.mrf.mxu0 }
 0x1e6   : > { %v637_v33 = vpop.f32.mrf.mxu0 }
 0x1f2   : > { %v1876_v21 = vpop.f32.mrf.mxu0 }
 0x1f4   : > { %v647_v60 = vpop.f32.mrf.mxu0 }
 0x1fb   : > { %v1879_v18 = vpop.f32.mrf.mxu0 }
 0x1fd   : > { %v657_v17 = vpop.f32.mrf.mxu0 }
 0x1ff   : > { %v1882_v29 = vpop.f32.mrf.mxu0 }
 0x201   : > { %v667_v19 = vpop.f32.mrf.mxu0  ;;  %v1887_v39 = vpop.f32.mrf.mxu1 }
 0x203   : > { %v1366_v55 = vpop.f32.mrf.mxu1 }
 0x205   : > { %v1890_v24 = vpop.f32.mrf.mxu1 }
 0x207   : > { %v1376_v14 = vpop.f32.mrf.mxu1 }
 0x289   : > { %v1925_v13 = vpop.f32.mrf.mxu0 }
 0x28a   : > { %v1457_v26 = vadd.f32 %v1925_v13, %v1887_v39 }
 0x28b   : > { %v1451_v12 = vpop.f32.mrf.mxu0 }
 0x28c   : > { %v1452_v38 = vadd.f32 %v1451_v12, %v1366_v55  ;;  %v1495_v7 = vadd.f32 %v1482_v11, %v1457_v26 }
 0x28d   : > { %v1928_v37 = vpop.f32.mrf.mxu0 }
 0x28e   : > { %v1467_v10 = vadd.f32 %v1928_v37, %v1890_v24  ;;  %v1494_v5 = vadd.f32 %v1477_v6, %v1452_v38  ;;  %v1499_v35 = vmax.f32 %v1495_v7, 0.0 }
 0x28f   : > { %v1461_v20 = vpop.f32.mrf.mxu0 }
 0x290   : > { %v1462_v36 = vadd.f32 %v1461_v20, %v1376_v14  ;;  %v1497_v8 = vadd.f32 %v1492_v9, %v1467_v10  ;;  %v1498_v4 = vmax.f32 %v1494_v5, 0.0 }
 0x292   : > { %v1496_v27 = vadd.f32 %v1487_v34, %v1462_v36  ;;  %v1501_v42 = vmax.f32 %v1497_v8, 0.0 }
 0x294   : > { %v1500_v48 = vmax.f32 %v1496_v27, 0.0  ;;  %1929 = vmatprep.subr.mxu1 %v1501_v42 }
 0x295   : > { %1930 = vmatpush3.msra.mxu1 %v1501_v42 }
 0x296   : > { %1931 = vmatprep.subr.mxu1 %v1500_v48 }
 0x297   : > { %1932 = vmatpush3.msra.mxu1 %v1500_v48 }
 0x298   : > { %1933 = vmatprep.subr.mxu1 %v1499_v35 }
 0x299   : > { %1934 = vmatpush3.msra.mxu1 %v1499_v35 }
 0x29a   : > { %1935 = vmatprep.subr.mxu1 %v1498_v4 }
 0x29b   : > { %1936 = vmatpush3.msra.mxu1 %v1498_v4 }
 0x29c   : > { %1938 = vmatmul.mubr.msk.f32.vlgmr.msra.gmra.mxu1 %vm1516_vm0, %v1503_v3 }
 0x35c   : > { %v1939_v2 = vpop.f32.mrf.mxu1 }
 0x35d   : > { %v1595_v0 = vadd.f32 %v1939_v2, %v1514_v41 }
 0x35e   : > { %v1589_v47 = vpop.f32.mrf.mxu1 }
 0x35f   : > { %v1599_v43 = vmax.f32 %v1595_v0, 0.0  ;;  %v1590_v22 = vadd.f32 %v1589_v47, %v1509_v40 }
 0x361   : > { %1601 = vst [vmem:[%s369_s26 + $0x8] sm:$0xff] %v1599_v43  ;;  %v1598_v63 = vmax.f32 %v1590_v22, 0.0 }
 0x363   : > { %1600 = vst [vmem:[%s369_s26] sm:$0xff] %v1598_v63 }
 0x364   : > { %2027 = shalt.err (!%p2024_p5)
}
 0x365   : > { %s2028_s25 = scalar_lea.hbm %s2865_s19, 256  ;;  %s2032_s14 = scalar_lea.hbm %s2920_s8, 512 }
 0x366   : > { %p2029_p6 = scmp.ne.s32.totalorder %s2865_s19, %s2028_s25  ;;  %p2033_p10 = scmp.lt.s32.totalorder %s2865_s19, %s2920_s8 }
 0x367   : > { %p2034_p11 = scmp.lt.s32.totalorder %s2032_s14, %s2028_s25 }
 0x368   : > { %p2030_p7 = pnand %p2029_p6, %p2181_p4 }
 0x369   : > { %p2035_p12 = por %p2034_p11, %p2033_p10 }
 0x36a   : > { %p2031_p9 = pneg %p2030_p7 }
 0x36c   : > { %p2036_p13 = pnand %p2035_p12, %p2031_p9 }
 0x36e   : > { %2039 = shalt.err (!%p2036_p13)
}
 0x36f   : > { %s2094_s23 = smov 128   ;;  %s2095_s30 = smov 8  }
 0x370   : > { %1940 = dma.vmem_to_hbm [thread:$0]  (%p2181_p4), %s2860_s12, 256, %s2865_s19, %s2867_s22, %s2094_s23, %s2094_s23, %s2095_s30  }
 0x371 PF: > { %p1946_p0 = scmp.ge.s32.totalorder %s2090_s10, 2  ;;  %s1632_s11 = sand.u32 1, %s2070_s27  }
 0x372   : > { %s1633_s24 = scalar_lea.sflag [#allocation3], %s1632_s11 }
 0x373   : > { %p1943_p1 = pnand %p1946_p0, %p2188_p8 }
 0x375   : > { %p1944_p2 = pneg %p1943_p1 }
 0x377   : > { %2065 = dma.done.wait (%p1944_p2), %s1633_s24, 256  }
 0x378   : > { %2067 = vsyncadd (%p1944_p2), %s1633_s24, 4294967040  ;;  %s21_s10 = sadd.s32 1, %s2090_s10   ;;  %s2931_s27 = smov %s2074_s28 }
 0x379   : > { %p18_p3 = scmp.ge.s32.totalorder %s21_s10, 4   ;;  %s2932_s28 = smov %s2078_s29 }
 0x37a   : > { %s2933_s29 = smov %s2194_s18  ;;  %s2934_s30 = smov %s2086_s9 }
 0x37b   : > { %s2935_s9 = smov %s2937_s13  ;;  %20 = sbr.rel (!%p18_p3) target bundleno = 4 (0x4), region = 96 }
 0x380   :  { %1638 = vsyncpa [#allocation3], 1 }
 0x381   :  { %1640 = vsyncpa [#allocation3 + $0x1], 1 }

</bundles_post_ra>
